<compile_context>
chip_gen: v6e
topology: v6e:2x2x1
jax: 0.10.0
libtpu: 0.0.40
codegen_flags: <defaults>
</compile_context>

<pallas_src>
import functools

import jax
import jax.numpy as jnp
from jax.experimental import pallas as pl
from jax.experimental.pallas import tpu as pltpu


# ----------------------------------------------------------------------------
# Fused kernel: LSTM stack (wavefront) + LayerNorm + Linear head.
# Ref order: x, (w_ih, w_hh, b) * num_layers, gamma, beta, fc_w, fc_b, out.
# ----------------------------------------------------------------------------
def _fused_lstm_model_kernel(*refs, T, B_pad, num_layers):
    x_ref = refs[0]                                        # (T*B_pad, D) bf16
    layer_refs = [refs[1 + 3 * l: 4 + 3 * l] for l in range(num_layers)]
    gamma_ref, beta_ref, fcw_ref, fcb_ref = refs[
        1 + 3 * num_layers: 5 + 3 * num_layers]
    o_ref = refs[-1]                                       # (B_pad, O_pad) f32

    L = num_layers
    H = layer_refs[0][1].shape[0]
    f32 = jnp.float32
    bf16 = jnp.bfloat16

    # Hoisted input projection for layer 0: one matmul for all time steps,
    # bias folded in.  bf16 operands, f32 accumulation.
    wih0_ref, _, b0_ref = layer_refs[0]
    xp0 = (jnp.dot(x_ref[...], wih0_ref[...], preferred_element_type=f32)
           + b0_ref[...])                                  # (T*B_pad, 4H) f32

    def cell_update(gates, c_prev):
        # PyTorch gate order (i, f, g, o).  One sigmoid pass over the 4H slab
        # (a single vreg at H=32); tanh only over the g lanes.
        sig = jax.nn.sigmoid(gates)
        i_g = sig[:, 0 * H:1 * H]
        f_g = sig[:, 1 * H:2 * H]
        o_g = sig[:, 3 * H:4 * H]
        g_g = jnp.tanh(gates[:, 2 * H:3 * H])
        c_new = f_g * c_prev + i_g * g_g
        h_new = o_g * jnp.tanh(c_new)
        return h_new, c_new

    h = [jnp.zeros((B_pad, H), f32) for _ in range(L)]
    c = [jnp.zeros((B_pad, H), f32) for _ in range(L)]

    # Wavefront over (layer, time): step s handles layer l at time t = s - l.
    # All dots inside a step read state committed at the end of step s-1, so
    # they are mutually independent and overlap in the MXU pipeline.
    for s in range(T + L - 1):
        new_hc = {}
        for l in range(L):
            t = s - l
            if not (0 <= t < T):
                continue
            wih_ref, whh_ref, b_ref = layer_refs[l]
            rec = jnp.dot(h[l].astype(bf16), whh_ref[...],
                          preferred_element_type=f32)
            if l == 0:
                gates = xp0[t * B_pad:(t + 1) * B_pad, :] + rec
            else:
                # Layer l's input at time t is layer l-1's output from the
                # previous wavefront step (still held in h[l-1]).
                inp = jnp.dot(h[l - 1].astype(bf16), wih_ref[...],
                              preferred_element_type=f32)
                gates = inp + rec + b_ref[...]
            new_hc[l] = cell_update(gates, c[l])
        for l, hc in new_hc.items():                       # commit after reads
            h[l], c[l] = hc

    # ---- Head: LayerNorm(H) -> Dropout(identity, eval) -> Linear ----
    h_last = h[L - 1]
    mean = jnp.mean(h_last, axis=-1, keepdims=True)
    var = jnp.mean((h_last - mean) ** 2, axis=-1, keepdims=True)
    hn = (h_last - mean) * jax.lax.rsqrt(var + 1e-5)
    hn = hn * gamma_ref[...] + beta_ref[...]
    o_ref[...] = (jnp.dot(hn.astype(bf16), fcw_ref[...],
                          preferred_element_type=f32)
                  + fcb_ref[...])


def _full_spec(shape):
    return pl.BlockSpec(shape, lambda: (0,) * len(shape))


@jax.jit
def lstm_model_forward(x_btd, params):
    """x_btd: (B, T, D) batch-first, like the PyTorch module (batch_first=True)."""
    B, T, D = x_btd.shape
    layers = params["lstm"]
    num_layers = len(layers)
    H = layers[0]["w_hh"].shape[0]
    O = params["fc_w"].shape[1]

    B_pad = max(8, -(-B // 8) * 8)          # native 8-sublane tile
    O_pad = max(128, -(-O // 128) * 128)    # lane-dense head output

    # Time-major, batch padded to B_pad, flattened; shipped as bf16 (pure MXU operand).
    x_tm = jnp.transpose(x_btd, (1, 0, 2)).astype(jnp.float32)   # (T, B, D)
    x_tm = jnp.pad(x_tm, ((0, 0), (0, B_pad - B), (0, 0)))
    x2d = x_tm.reshape(T * B_pad, D).astype(jnp.bfloat16)

    in_specs = [_full_spec((T * B_pad, D))]
    args = [x2d]
    for l, layer in enumerate(layers):
        d_in = D if l == 0 else H
        in_specs += [
            _full_spec((d_in, 4 * H)),
            _full_spec((H, 4 * H)),
            _full_spec((1, 4 * H)),
        ]
        args += [layer["w_ih"].astype(jnp.bfloat16),
                 layer["w_hh"].astype(jnp.bfloat16),
                 layer["b"].astype(jnp.float32)]

    fc_w = jnp.pad(params["fc_w"], ((0, 0), (0, O_pad - O))).astype(jnp.bfloat16)
    fc_b = jnp.pad(params["fc_b"], ((0, 0), (0, O_pad - O))).astype(jnp.float32)
    in_specs += [_full_spec((1, H)), _full_spec((1, H)),
                 _full_spec((H, O_pad)), _full_spec((1, O_pad))]
    args += [params["ln_gamma"], params["ln_beta"], fc_w, fc_b]

    kernel = functools.partial(
        _fused_lstm_model_kernel, T=T, B_pad=B_pad, num_layers=num_layers)

    out_pad = pl.pallas_call(
        kernel,
        out_shape=jax.ShapeDtypeStruct((B_pad, O_pad), jnp.float32),
        in_specs=in_specs,
        out_specs=_full_spec((B_pad, O_pad)),
        compiler_params=pltpu.CompilerParams(vmem_limit_bytes=32 * 1024 * 1024),
    )(*args)
    return out_pad[:B, :O]


# ----------------------------------------------------------------------------
# Parameter init (self-contained; layout is the transpose of nn.LSTM/nn.Linear).
# ----------------------------------------------------------------------------
def init_params(key, input_size, hidden_size, num_layers, output_size):
    params = {"lstm": []}
    H = hidden_size
    bound = 1.0 / jnp.sqrt(H)
    for l in range(num_layers):
        d_in = input_size if l == 0 else H
        key, k1, k2, k3, k4 = jax.random.split(key, 5)
        w_ih = jax.random.uniform(k1, (d_in, 4 * H), jnp.float32, -bound, bound)
        w_hh = jax.random.uniform(k2, (H, 4 * H), jnp.float32, -bound, bound)
        b_ih = jax.random.uniform(k3, (1, 4 * H), jnp.float32, -bound, bound)
        b_hh = jax.random.uniform(k4, (1, 4 * H), jnp.float32, -bound, bound)
        params["lstm"].append({"w_ih": w_ih, "w_hh": w_hh, "b": b_ih + b_hh})
    key, k5, k6 = jax.random.split(key, 3)
    params["ln_gamma"] = jnp.ones((1, H), jnp.float32)
    params["ln_beta"] = jnp.zeros((1, H), jnp.float32)
    params["fc_w"] = jax.random.uniform(k5, (H, output_size), jnp.float32, -bound, bound)
    params["fc_b"] = jax.random.uniform(k6, (1, output_size), jnp.float32, -bound, bound)
    return params


# ----------------------------------------------------------------------------
# Pure-JAX f32 reference (PyTorch-faithful) for the correctness check.
# ----------------------------------------------------------------------------
def lstm_model_reference(x_btd, params):
    x = jnp.transpose(x_btd, (1, 0, 2)).astype(jnp.float32)   # (T, B, D)
    B = x.shape[1]
    for layer in params["lstm"]:
        w_ih, w_hh, b = layer["w_ih"], layer["w_hh"], layer["b"]
        H = w_hh.shape[0]

        def step(carry, x_t):
            h, c = carry
            g = x_t @ w_ih + h @ w_hh + b
            i = jax.nn.sigmoid(g[:, 0 * H:1 * H])
            f = jax.nn.sigmoid(g[:, 1 * H:2 * H])
            gg = jnp.tanh(g[:, 2 * H:3 * H])
            o = jax.nn.sigmoid(g[:, 3 * H:4 * H])
            c = f * c + i * gg
            h = o * jnp.tanh(c)
            return (h, c), h

        init = (jnp.zeros((B, H), jnp.float32), jnp.zeros((B, H), jnp.float32))
        _, hs = jax.lax.scan(step, init, x)
        x = hs
    h = x[-1]
    mean = jnp.mean(h, -1, keepdims=True)
    var = jnp.mean((h - mean) ** 2, -1, keepdims=True)
    hn = (h - mean) * jax.lax.rsqrt(var + 1e-5)
    hn = hn * params["ln_gamma"] + params["ln_beta"]
    return hn @ params["fc_w"] + params["fc_b"]


if __name__ == "__main__":
    # Small shapes consistent with the module's forward.
    B, T, D = 2, 8, 16          # batch, seq, input_size
    H, L, O = 32, 3, 3          # hidden_size, num_layers, output_size

    key = jax.random.PRNGKey(0)
    key, kx = jax.random.split(key)
    x = jax.random.normal(kx, (B, T, D), jnp.float32)

    params = init_params(key, input_size=D, hidden_size=H,
                         num_layers=L, output_size=O)

    out = lstm_model_forward(x, params)
    out = jax.block_until_ready(out)
    assert out.shape == (B, O), out.shape

    ref = jax.block_until_ready(lstm_model_reference(x, params))
    # Tolerance reflects bf16 MXU operands (weights + activation casts) vs the
    # pure-f32 reference; all gate math / accumulation in the kernel is f32.
    assert jnp.allclose(out, ref, atol=5e-2, rtol=5e-2), (out, ref)

    print("KERNEL_OK")
</pallas_src>

<mosaic_0001>
module attributes {stable_mosaic.version = 11 : i64} {
  func.func @_fused_lstm_model_kernel(%arg0: memref<64x16xbf16, #tpu.memory_space<vmem>>, %arg1: memref<16x128xbf16, #tpu.memory_space<vmem>>, %arg2: memref<32x128xbf16, #tpu.memory_space<vmem>>, %arg3: memref<1x128xf32, #tpu.memory_space<vmem>>, %arg4: memref<32x128xbf16, #tpu.memory_space<vmem>>, %arg5: memref<32x128xbf16, #tpu.memory_space<vmem>>, %arg6: memref<1x128xf32, #tpu.memory_space<vmem>>, %arg7: memref<32x128xbf16, #tpu.memory_space<vmem>>, %arg8: memref<32x128xbf16, #tpu.memory_space<vmem>>, %arg9: memref<1x128xf32, #tpu.memory_space<vmem>>, %arg10: memref<1x32xf32, #tpu.memory_space<vmem>>, %arg11: memref<1x32xf32, #tpu.memory_space<vmem>>, %arg12: memref<32x128xbf16, #tpu.memory_space<vmem>>, %arg13: memref<1x128xf32, #tpu.memory_space<vmem>>, %arg14: memref<8x128xf32, #tpu.memory_space<vmem>>) attributes {dimension_semantics = [], scalar_prefetch = 0 : i64, scratch_operands = 0 : i64, tpu.core_type = #tpu.core_type<tc>} {
    %c0 = arith.constant 0 : index
    %c0_0 = arith.constant 0 : index
    %0 = vector.load %arg0[%c0, %c0_0] : memref<64x16xbf16, #tpu.memory_space<vmem>>, vector<64x16xbf16>
    %c0_1 = arith.constant 0 : index
    %c0_2 = arith.constant 0 : index
    %1 = vector.load %arg1[%c0_1, %c0_2] : memref<16x128xbf16, #tpu.memory_space<vmem>>, vector<16x128xbf16>
    %cst = arith.constant dense<0.000000e+00> : vector<64x128xf32>
    %2 = tpu.matmul %0, %1, %cst {dimension_numbers = #tpu.dot_dimension_numbers<[1], [0], [0], [1], [0, 0, 1, 1], [], []>} : vector<64x16xbf16>, vector<16x128xbf16>, vector<64x128xf32> -> vector<64x128xf32>
    %c0_3 = arith.constant 0 : index
    %c0_4 = arith.constant 0 : index
    %3 = vector.load %arg3[%c0_3, %c0_4] : memref<1x128xf32, #tpu.memory_space<vmem>>, vector<1x128xf32>
    %4 = vector.broadcast %3 : vector<1x128xf32> to vector<64x128xf32>
    %5 = arith.addf %2, %4 : vector<64x128xf32>
    %cst_5 = arith.constant 0.000000e+00 : f32
    %6 = vector.broadcast %cst_5 : f32 to vector<8x32xf32>
    %cst_6 = arith.constant 0.000000e+00 : f32
    %7 = vector.broadcast %cst_6 : f32 to vector<8x32xf32>
    %cst_7 = arith.constant 0.000000e+00 : f32
    %8 = vector.broadcast %cst_7 : f32 to vector<8x32xf32>
    %cst_8 = arith.constant 0.000000e+00 : f32
    %9 = vector.broadcast %cst_8 : f32 to vector<8x32xf32>
    %cst_9 = arith.constant 0.000000e+00 : f32
    %10 = vector.broadcast %cst_9 : f32 to vector<8x32xf32>
    %cst_10 = arith.constant 0.000000e+00 : f32
    %11 = vector.broadcast %cst_10 : f32 to vector<8x32xf32>
    %12 = arith.truncf %6 : vector<8x32xf32> to vector<8x32xbf16>
    %c0_11 = arith.constant 0 : index
    %c0_12 = arith.constant 0 : index
    %13 = vector.load %arg2[%c0_11, %c0_12] : memref<32x128xbf16, #tpu.memory_space<vmem>>, vector<32x128xbf16>
    %cst_13 = arith.constant dense<0.000000e+00> : vector<8x128xf32>
    %14 = tpu.matmul %12, %13, %cst_13 {dimension_numbers = #tpu.dot_dimension_numbers<[1], [0], [0], [1], [0, 0, 1, 1], [], []>} : vector<8x32xbf16>, vector<32x128xbf16>, vector<8x128xf32> -> vector<8x128xf32>
    %15 = vector.extract_strided_slice %5 {offsets = [0, 0], sizes = [8, 128], strides = [1, 1]} : vector<64x128xf32> to vector<8x128xf32>
    %16 = arith.addf %15, %14 : vector<8x128xf32>
    %17 = arith.negf %16 : vector<8x128xf32>
    %18 = math.exp %17 : vector<8x128xf32>
    %cst_14 = arith.constant 1.000000e+00 : f32
    %19 = vector.broadcast %cst_14 : f32 to vector<8x128xf32>
    %20 = arith.addf %19, %18 : vector<8x128xf32>
    %21 = arith.divf %19, %20 : vector<8x128xf32>
    %22 = vector.extract_strided_slice %21 {offsets = [0, 0], sizes = [8, 32], strides = [1, 1]} : vector<8x128xf32> to vector<8x32xf32>
    %23 = vector.extract_strided_slice %21 {offsets = [0, 32], sizes = [8, 32], strides = [1, 1]} : vector<8x128xf32> to vector<8x32xf32>
    %24 = vector.extract_strided_slice %21 {offsets = [0, 96], sizes = [8, 32], strides = [1, 1]} : vector<8x128xf32> to vector<8x32xf32>
    %25 = vector.extract_strided_slice %16 {offsets = [0, 64], sizes = [8, 32], strides = [1, 1]} : vector<8x128xf32> to vector<8x32xf32>
    %26 = math.tanh %25 : vector<8x32xf32>
    %27 = arith.mulf %23, %9 : vector<8x32xf32>
    %28 = arith.mulf %22, %26 : vector<8x32xf32>
    %29 = arith.addf %27, %28 : vector<8x32xf32>
    %30 = math.tanh %29 : vector<8x32xf32>
    %31 = arith.mulf %24, %30 : vector<8x32xf32>
    %32 = arith.truncf %31 : vector<8x32xf32> to vector<8x32xbf16>
    %c0_15 = arith.constant 0 : index
    %c0_16 = arith.constant 0 : index
    %33 = vector.load %arg2[%c0_15, %c0_16] : memref<32x128xbf16, #tpu.memory_space<vmem>>, vector<32x128xbf16>
    %cst_17 = arith.constant dense<0.000000e+00> : vector<8x128xf32>
    %34 = tpu.matmul %32, %33, %cst_17 {dimension_numbers = #tpu.dot_dimension_numbers<[1], [0], [0], [1], [0, 0, 1, 1], [], []>} : vector<8x32xbf16>, vector<32x128xbf16>, vector<8x128xf32> -> vector<8x128xf32>
    %35 = vector.extract_strided_slice %5 {offsets = [8, 0], sizes = [8, 128], strides = [1, 1]} : vector<64x128xf32> to vector<8x128xf32>
    %36 = arith.addf %35, %34 : vector<8x128xf32>
    %37 = arith.negf %36 : vector<8x128xf32>
    %38 = math.exp %37 : vector<8x128xf32>
    %cst_18 = arith.constant 1.000000e+00 : f32
    %39 = vector.broadcast %cst_18 : f32 to vector<8x128xf32>
    %40 = arith.addf %39, %38 : vector<8x128xf32>
    %41 = arith.divf %39, %40 : vector<8x128xf32>
    %42 = vector.extract_strided_slice %41 {offsets = [0, 0], sizes = [8, 32], strides = [1, 1]} : vector<8x128xf32> to vector<8x32xf32>
    %43 = vector.extract_strided_slice %41 {offsets = [0, 32], sizes = [8, 32], strides = [1, 1]} : vector<8x128xf32> to vector<8x32xf32>
    %44 = vector.extract_strided_slice %41 {offsets = [0, 96], sizes = [8, 32], strides = [1, 1]} : vector<8x128xf32> to vector<8x32xf32>
    %45 = vector.extract_strided_slice %36 {offsets = [0, 64], sizes = [8, 32], strides = [1, 1]} : vector<8x128xf32> to vector<8x32xf32>
    %46 = math.tanh %45 : vector<8x32xf32>
    %47 = arith.mulf %43, %29 : vector<8x32xf32>
    %48 = arith.mulf %42, %46 : vector<8x32xf32>
    %49 = arith.addf %47, %48 : vector<8x32xf32>
    %50 = math.tanh %49 : vector<8x32xf32>
    %51 = arith.mulf %44, %50 : vector<8x32xf32>
    %52 = arith.truncf %7 : vector<8x32xf32> to vector<8x32xbf16>
    %c0_19 = arith.constant 0 : index
    %c0_20 = arith.constant 0 : index
    %53 = vector.load %arg5[%c0_19, %c0_20] : memref<32x128xbf16, #tpu.memory_space<vmem>>, vector<32x128xbf16>
    %cst_21 = arith.constant dense<0.000000e+00> : vector<8x128xf32>
    %54 = tpu.matmul %52, %53, %cst_21 {dimension_numbers = #tpu.dot_dimension_numbers<[1], [0], [0], [1], [0, 0, 1, 1], [], []>} : vector<8x32xbf16>, vector<32x128xbf16>, vector<8x128xf32> -> vector<8x128xf32>
    %55 = arith.truncf %31 : vector<8x32xf32> to vector<8x32xbf16>
    %c0_22 = arith.constant 0 : index
    %c0_23 = arith.constant 0 : index
    %56 = vector.load %arg4[%c0_22, %c0_23] : memref<32x128xbf16, #tpu.memory_space<vmem>>, vector<32x128xbf16>
    %cst_24 = arith.constant dense<0.000000e+00> : vector<8x128xf32>
    %57 = tpu.matmul %55, %56, %cst_24 {dimension_numbers = #tpu.dot_dimension_numbers<[1], [0], [0], [1], [0, 0, 1, 1], [], []>} : vector<8x32xbf16>, vector<32x128xbf16>, vector<8x128xf32> -> vector<8x128xf32>
    %58 = arith.addf %57, %54 : vector<8x128xf32>
    %c0_25 = arith.constant 0 : index
    %c0_26 = arith.constant 0 : index
    %59 = vector.load %arg6[%c0_25, %c0_26] : memref<1x128xf32, #tpu.memory_space<vmem>>, vector<1x128xf32>
    %60 = vector.broadcast %59 : vector<1x128xf32> to vector<8x128xf32>
    %61 = arith.addf %58, %60 : vector<8x128xf32>
    %62 = arith.negf %61 : vector<8x128xf32>
    %63 = math.exp %62 : vector<8x128xf32>
    %cst_27 = arith.constant 1.000000e+00 : f32
    %64 = vector.broadcast %cst_27 : f32 to vector<8x128xf32>
    %65 = arith.addf %64, %63 : vector<8x128xf32>
    %66 = arith.divf %64, %65 : vector<8x128xf32>
    %67 = vector.extract_strided_slice %66 {offsets = [0, 0], sizes = [8, 32], strides = [1, 1]} : vector<8x128xf32> to vector<8x32xf32>
    %68 = vector.extract_strided_slice %66 {offsets = [0, 32], sizes = [8, 32], strides = [1, 1]} : vector<8x128xf32> to vector<8x32xf32>
    %69 = vector.extract_strided_slice %66 {offsets = [0, 96], sizes = [8, 32], strides = [1, 1]} : vector<8x128xf32> to vector<8x32xf32>
    %70 = vector.extract_strided_slice %61 {offsets = [0, 64], sizes = [8, 32], strides = [1, 1]} : vector<8x128xf32> to vector<8x32xf32>
    %71 = math.tanh %70 : vector<8x32xf32>
    %72 = arith.mulf %68, %10 : vector<8x32xf32>
    %73 = arith.mulf %67, %71 : vector<8x32xf32>
    %74 = arith.addf %72, %73 : vector<8x32xf32>
    %75 = math.tanh %74 : vector<8x32xf32>
    %76 = arith.mulf %69, %75 : vector<8x32xf32>
    %77 = arith.truncf %51 : vector<8x32xf32> to vector<8x32xbf16>
    %c0_28 = arith.constant 0 : index
    %c0_29 = arith.constant 0 : index
    %78 = vector.load %arg2[%c0_28, %c0_29] : memref<32x128xbf16, #tpu.memory_space<vmem>>, vector<32x128xbf16>
    %cst_30 = arith.constant dense<0.000000e+00> : vector<8x128xf32>
    %79 = tpu.matmul %77, %78, %cst_30 {dimension_numbers = #tpu.dot_dimension_numbers<[1], [0], [0], [1], [0, 0, 1, 1], [], []>} : vector<8x32xbf16>, vector<32x128xbf16>, vector<8x128xf32> -> vector<8x128xf32>
    %80 = vector.extract_strided_slice %5 {offsets = [16, 0], sizes = [8, 128], strides = [1, 1]} : vector<64x128xf32> to vector<8x128xf32>
    %81 = arith.addf %80, %79 : vector<8x128xf32>
    %82 = arith.negf %81 : vector<8x128xf32>
    %83 = math.exp %82 : vector<8x128xf32>
    %cst_31 = arith.constant 1.000000e+00 : f32
    %84 = vector.broadcast %cst_31 : f32 to vector<8x128xf32>
    %85 = arith.addf %84, %83 : vector<8x128xf32>
    %86 = arith.divf %84, %85 : vector<8x128xf32>
    %87 = vector.extract_strided_slice %86 {offsets = [0, 0], sizes = [8, 32], strides = [1, 1]} : vector<8x128xf32> to vector<8x32xf32>
    %88 = vector.extract_strided_slice %86 {offsets = [0, 32], sizes = [8, 32], strides = [1, 1]} : vector<8x128xf32> to vector<8x32xf32>
    %89 = vector.extract_strided_slice %86 {offsets = [0, 96], sizes = [8, 32], strides = [1, 1]} : vector<8x128xf32> to vector<8x32xf32>
    %90 = vector.extract_strided_slice %81 {offsets = [0, 64], sizes = [8, 32], strides = [1, 1]} : vector<8x128xf32> to vector<8x32xf32>
    %91 = math.tanh %90 : vector<8x32xf32>
    %92 = arith.mulf %88, %49 : vector<8x32xf32>
    %93 = arith.mulf %87, %91 : vector<8x32xf32>
    %94 = arith.addf %92, %93 : vector<8x32xf32>
    %95 = math.tanh %94 : vector<8x32xf32>
    %96 = arith.mulf %89, %95 : vector<8x32xf32>
    %97 = arith.truncf %76 : vector<8x32xf32> to vector<8x32xbf16>
    %c0_32 = arith.constant 0 : index
    %c0_33 = arith.constant 0 : index
    %98 = vector.load %arg5[%c0_32, %c0_33] : memref<32x128xbf16, #tpu.memory_space<vmem>>, vector<32x128xbf16>
    %cst_34 = arith.constant dense<0.000000e+00> : vector<8x128xf32>
    %99 = tpu.matmul %97, %98, %cst_34 {dimension_numbers = #tpu.dot_dimension_numbers<[1], [0], [0], [1], [0, 0, 1, 1], [], []>} : vector<8x32xbf16>, vector<32x128xbf16>, vector<8x128xf32> -> vector<8x128xf32>
    %100 = arith.truncf %51 : vector<8x32xf32> to vector<8x32xbf16>
    %c0_35 = arith.constant 0 : index
    %c0_36 = arith.constant 0 : index
    %101 = vector.load %arg4[%c0_35, %c0_36] : memref<32x128xbf16, #tpu.memory_space<vmem>>, vector<32x128xbf16>
    %cst_37 = arith.constant dense<0.000000e+00> : vector<8x128xf32>
    %102 = tpu.matmul %100, %101, %cst_37 {dimension_numbers = #tpu.dot_dimension_numbers<[1], [0], [0], [1], [0, 0, 1, 1], [], []>} : vector<8x32xbf16>, vector<32x128xbf16>, vector<8x128xf32> -> vector<8x128xf32>
    %103 = arith.addf %102, %99 : vector<8x128xf32>
    %c0_38 = arith.constant 0 : index
    %c0_39 = arith.constant 0 : index
    %104 = vector.load %arg6[%c0_38, %c0_39] : memref<1x128xf32, #tpu.memory_space<vmem>>, vector<1x128xf32>
    %105 = vector.broadcast %104 : vector<1x128xf32> to vector<8x128xf32>
    %106 = arith.addf %103, %105 : vector<8x128xf32>
    %107 = arith.negf %106 : vector<8x128xf32>
    %108 = math.exp %107 : vector<8x128xf32>
    %cst_40 = arith.constant 1.000000e+00 : f32
    %109 = vector.broadcast %cst_40 : f32 to vector<8x128xf32>
    %110 = arith.addf %109, %108 : vector<8x128xf32>
    %111 = arith.divf %109, %110 : vector<8x128xf32>
    %112 = vector.extract_strided_slice %111 {offsets = [0, 0], sizes = [8, 32], strides = [1, 1]} : vector<8x128xf32> to vector<8x32xf32>
    %113 = vector.extract_strided_slice %111 {offsets = [0, 32], sizes = [8, 32], strides = [1, 1]} : vector<8x128xf32> to vector<8x32xf32>
    %114 = vector.extract_strided_slice %111 {offsets = [0, 96], sizes = [8, 32], strides = [1, 1]} : vector<8x128xf32> to vector<8x32xf32>
    %115 = vector.extract_strided_slice %106 {offsets = [0, 64], sizes = [8, 32], strides = [1, 1]} : vector<8x128xf32> to vector<8x32xf32>
    %116 = math.tanh %115 : vector<8x32xf32>
    %117 = arith.mulf %113, %74 : vector<8x32xf32>
    %118 = arith.mulf %112, %116 : vector<8x32xf32>
    %119 = arith.addf %117, %118 : vector<8x32xf32>
    %120 = math.tanh %119 : vector<8x32xf32>
    %121 = arith.mulf %114, %120 : vector<8x32xf32>
    %122 = arith.truncf %8 : vector<8x32xf32> to vector<8x32xbf16>
    %c0_41 = arith.constant 0 : index
    %c0_42 = arith.constant 0 : index
    %123 = vector.load %arg8[%c0_41, %c0_42] : memref<32x128xbf16, #tpu.memory_space<vmem>>, vector<32x128xbf16>
    %cst_43 = arith.constant dense<0.000000e+00> : vector<8x128xf32>
    %124 = tpu.matmul %122, %123, %cst_43 {dimension_numbers = #tpu.dot_dimension_numbers<[1], [0], [0], [1], [0, 0, 1, 1], [], []>} : vector<8x32xbf16>, vector<32x128xbf16>, vector<8x128xf32> -> vector<8x128xf32>
    %125 = arith.truncf %76 : vector<8x32xf32> to vector<8x32xbf16>
    %c0_44 = arith.constant 0 : index
    %c0_45 = arith.constant 0 : index
    %126 = vector.load %arg7[%c0_44, %c0_45] : memref<32x128xbf16, #tpu.memory_space<vmem>>, vector<32x128xbf16>
    %cst_46 = arith.constant dense<0.000000e+00> : vector<8x128xf32>
    %127 = tpu.matmul %125, %126, %cst_46 {dimension_numbers = #tpu.dot_dimension_numbers<[1], [0], [0], [1], [0, 0, 1, 1], [], []>} : vector<8x32xbf16>, vector<32x128xbf16>, vector<8x128xf32> -> vector<8x128xf32>
    %128 = arith.addf %127, %124 : vector<8x128xf32>
    %c0_47 = arith.constant 0 : index
    %c0_48 = arith.constant 0 : index
    %129 = vector.load %arg9[%c0_47, %c0_48] : memref<1x128xf32, #tpu.memory_space<vmem>>, vector<1x128xf32>
    %130 = vector.broadcast %129 : vector<1x128xf32> to vector<8x128xf32>
    %131 = arith.addf %128, %130 : vector<8x128xf32>
    %132 = arith.negf %131 : vector<8x128xf32>
    %133 = math.exp %132 : vector<8x128xf32>
    %cst_49 = arith.constant 1.000000e+00 : f32
    %134 = vector.broadcast %cst_49 : f32 to vector<8x128xf32>
    %135 = arith.addf %134, %133 : vector<8x128xf32>
    %136 = arith.divf %134, %135 : vector<8x128xf32>
    %137 = vector.extract_strided_slice %136 {offsets = [0, 0], sizes = [8, 32], strides = [1, 1]} : vector<8x128xf32> to vector<8x32xf32>
    %138 = vector.extract_strided_slice %136 {offsets = [0, 32], sizes = [8, 32], strides = [1, 1]} : vector<8x128xf32> to vector<8x32xf32>
    %139 = vector.extract_strided_slice %136 {offsets = [0, 96], sizes = [8, 32], strides = [1, 1]} : vector<8x128xf32> to vector<8x32xf32>
    %140 = vector.extract_strided_slice %131 {offsets = [0, 64], sizes = [8, 32], strides = [1, 1]} : vector<8x128xf32> to vector<8x32xf32>
    %141 = math.tanh %140 : vector<8x32xf32>
    %142 = arith.mulf %138, %11 : vector<8x32xf32>
    %143 = arith.mulf %137, %141 : vector<8x32xf32>
    %144 = arith.addf %142, %143 : vector<8x32xf32>
    %145 = math.tanh %144 : vector<8x32xf32>
    %146 = arith.mulf %139, %145 : vector<8x32xf32>
    %147 = arith.truncf %96 : vector<8x32xf32> to vector<8x32xbf16>
    %c0_50 = arith.constant 0 : index
    %c0_51 = arith.constant 0 : index
    %148 = vector.load %arg2[%c0_50, %c0_51] : memref<32x128xbf16, #tpu.memory_space<vmem>>, vector<32x128xbf16>
    %cst_52 = arith.constant dense<0.000000e+00> : vector<8x128xf32>
    %149 = tpu.matmul %147, %148, %cst_52 {dimension_numbers = #tpu.dot_dimension_numbers<[1], [0], [0], [1], [0, 0, 1, 1], [], []>} : vector<8x32xbf16>, vector<32x128xbf16>, vector<8x128xf32> -> vector<8x128xf32>
    %150 = vector.extract_strided_slice %5 {offsets = [24, 0], sizes = [8, 128], strides = [1, 1]} : vector<64x128xf32> to vector<8x128xf32>
    %151 = arith.addf %150, %149 : vector<8x128xf32>
    %152 = arith.negf %151 : vector<8x128xf32>
    %153 = math.exp %152 : vector<8x128xf32>
    %cst_53 = arith.constant 1.000000e+00 : f32
    %154 = vector.broadcast %cst_53 : f32 to vector<8x128xf32>
    %155 = arith.addf %154, %153 : vector<8x128xf32>
    %156 = arith.divf %154, %155 : vector<8x128xf32>
    %157 = vector.extract_strided_slice %156 {offsets = [0, 0], sizes = [8, 32], strides = [1, 1]} : vector<8x128xf32> to vector<8x32xf32>
    %158 = vector.extract_strided_slice %156 {offsets = [0, 32], sizes = [8, 32], strides = [1, 1]} : vector<8x128xf32> to vector<8x32xf32>
    %159 = vector.extract_strided_slice %156 {offsets = [0, 96], sizes = [8, 32], strides = [1, 1]} : vector<8x128xf32> to vector<8x32xf32>
    %160 = vector.extract_strided_slice %151 {offsets = [0, 64], sizes = [8, 32], strides = [1, 1]} : vector<8x128xf32> to vector<8x32xf32>
    %161 = math.tanh %160 : vector<8x32xf32>
    %162 = arith.mulf %158, %94 : vector<8x32xf32>
    %163 = arith.mulf %157, %161 : vector<8x32xf32>
    %164 = arith.addf %162, %163 : vector<8x32xf32>
    %165 = math.tanh %164 : vector<8x32xf32>
    %166 = arith.mulf %159, %165 : vector<8x32xf32>
    %167 = arith.truncf %121 : vector<8x32xf32> to vector<8x32xbf16>
    %c0_54 = arith.constant 0 : index
    %c0_55 = arith.constant 0 : index
    %168 = vector.load %arg5[%c0_54, %c0_55] : memref<32x128xbf16, #tpu.memory_space<vmem>>, vector<32x128xbf16>
    %cst_56 = arith.constant dense<0.000000e+00> : vector<8x128xf32>
    %169 = tpu.matmul %167, %168, %cst_56 {dimension_numbers = #tpu.dot_dimension_numbers<[1], [0], [0], [1], [0, 0, 1, 1], [], []>} : vector<8x32xbf16>, vector<32x128xbf16>, vector<8x128xf32> -> vector<8x128xf32>
    %170 = arith.truncf %96 : vector<8x32xf32> to vector<8x32xbf16>
    %c0_57 = arith.constant 0 : index
    %c0_58 = arith.constant 0 : index
    %171 = vector.load %arg4[%c0_57, %c0_58] : memref<32x128xbf16, #tpu.memory_space<vmem>>, vector<32x128xbf16>
    %cst_59 = arith.constant dense<0.000000e+00> : vector<8x128xf32>
    %172 = tpu.matmul %170, %171, %cst_59 {dimension_numbers = #tpu.dot_dimension_numbers<[1], [0], [0], [1], [0, 0, 1, 1], [], []>} : vector<8x32xbf16>, vector<32x128xbf16>, vector<8x128xf32> -> vector<8x128xf32>
    %173 = arith.addf %172, %169 : vector<8x128xf32>
    %c0_60 = arith.constant 0 : index
    %c0_61 = arith.constant 0 : index
    %174 = vector.load %arg6[%c0_60, %c0_61] : memref<1x128xf32, #tpu.memory_space<vmem>>, vector<1x128xf32>
    %175 = vector.broadcast %174 : vector<1x128xf32> to vector<8x128xf32>
    %176 = arith.addf %173, %175 : vector<8x128xf32>
    %177 = arith.negf %176 : vector<8x128xf32>
    %178 = math.exp %177 : vector<8x128xf32>
    %cst_62 = arith.constant 1.000000e+00 : f32
    %179 = vector.broadcast %cst_62 : f32 to vector<8x128xf32>
    %180 = arith.addf %179, %178 : vector<8x128xf32>
    %181 = arith.divf %179, %180 : vector<8x128xf32>
    %182 = vector.extract_strided_slice %181 {offsets = [0, 0], sizes = [8, 32], strides = [1, 1]} : vector<8x128xf32> to vector<8x32xf32>
    %183 = vector.extract_strided_slice %181 {offsets = [0, 32], sizes = [8, 32], strides = [1, 1]} : vector<8x128xf32> to vector<8x32xf32>
    %184 = vector.extract_strided_slice %181 {offsets = [0, 96], sizes = [8, 32], strides = [1, 1]} : vector<8x128xf32> to vector<8x32xf32>
    %185 = vector.extract_strided_slice %176 {offsets = [0, 64], sizes = [8, 32], strides = [1, 1]} : vector<8x128xf32> to vector<8x32xf32>
    %186 = math.tanh %185 : vector<8x32xf32>
    %187 = arith.mulf %183, %119 : vector<8x32xf32>
    %188 = arith.mulf %182, %186 : vector<8x32xf32>
    %189 = arith.addf %187, %188 : vector<8x32xf32>
    %190 = math.tanh %189 : vector<8x32xf32>
    %191 = arith.mulf %184, %190 : vector<8x32xf32>
    %192 = arith.truncf %146 : vector<8x32xf32> to vector<8x32xbf16>
    %c0_63 = arith.constant 0 : index
    %c0_64 = arith.constant 0 : index
    %193 = vector.load %arg8[%c0_63, %c0_64] : memref<32x128xbf16, #tpu.memory_space<vmem>>, vector<32x128xbf16>
    %cst_65 = arith.constant dense<0.000000e+00> : vector<8x128xf32>
    %194 = tpu.matmul %192, %193, %cst_65 {dimension_numbers = #tpu.dot_dimension_numbers<[1], [0], [0], [1], [0, 0, 1, 1], [], []>} : vector<8x32xbf16>, vector<32x128xbf16>, vector<8x128xf32> -> vector<8x128xf32>
    %195 = arith.truncf %121 : vector<8x32xf32> to vector<8x32xbf16>
    %c0_66 = arith.constant 0 : index
    %c0_67 = arith.constant 0 : index
    %196 = vector.load %arg7[%c0_66, %c0_67] : memref<32x128xbf16, #tpu.memory_space<vmem>>, vector<32x128xbf16>
    %cst_68 = arith.constant dense<0.000000e+00> : vector<8x128xf32>
    %197 = tpu.matmul %195, %196, %cst_68 {dimension_numbers = #tpu.dot_dimension_numbers<[1], [0], [0], [1], [0, 0, 1, 1], [], []>} : vector<8x32xbf16>, vector<32x128xbf16>, vector<8x128xf32> -> vector<8x128xf32>
    %198 = arith.addf %197, %194 : vector<8x128xf32>
    %c0_69 = arith.constant 0 : index
    %c0_70 = arith.constant 0 : index
    %199 = vector.load %arg9[%c0_69, %c0_70] : memref<1x128xf32, #tpu.memory_space<vmem>>, vector<1x128xf32>
    %200 = vector.broadcast %199 : vector<1x128xf32> to vector<8x128xf32>
    %201 = arith.addf %198, %200 : vector<8x128xf32>
    %202 = arith.negf %201 : vector<8x128xf32>
    %203 = math.exp %202 : vector<8x128xf32>
    %cst_71 = arith.constant 1.000000e+00 : f32
    %204 = vector.broadcast %cst_71 : f32 to vector<8x128xf32>
    %205 = arith.addf %204, %203 : vector<8x128xf32>
    %206 = arith.divf %204, %205 : vector<8x128xf32>
    %207 = vector.extract_strided_slice %206 {offsets = [0, 0], sizes = [8, 32], strides = [1, 1]} : vector<8x128xf32> to vector<8x32xf32>
    %208 = vector.extract_strided_slice %206 {offsets = [0, 32], sizes = [8, 32], strides = [1, 1]} : vector<8x128xf32> to vector<8x32xf32>
    %209 = vector.extract_strided_slice %206 {offsets = [0, 96], sizes = [8, 32], strides = [1, 1]} : vector<8x128xf32> to vector<8x32xf32>
    %210 = vector.extract_strided_slice %201 {offsets = [0, 64], sizes = [8, 32], strides = [1, 1]} : vector<8x128xf32> to vector<8x32xf32>
    %211 = math.tanh %210 : vector<8x32xf32>
    %212 = arith.mulf %208, %144 : vector<8x32xf32>
    %213 = arith.mulf %207, %211 : vector<8x32xf32>
    %214 = arith.addf %212, %213 : vector<8x32xf32>
    %215 = math.tanh %214 : vector<8x32xf32>
    %216 = arith.mulf %209, %215 : vector<8x32xf32>
    %217 = arith.truncf %166 : vector<8x32xf32> to vector<8x32xbf16>
    %c0_72 = arith.constant 0 : index
    %c0_73 = arith.constant 0 : index
    %218 = vector.load %arg2[%c0_72, %c0_73] : memref<32x128xbf16, #tpu.memory_space<vmem>>, vector<32x128xbf16>
    %cst_74 = arith.constant dense<0.000000e+00> : vector<8x128xf32>
    %219 = tpu.matmul %217, %218, %cst_74 {dimension_numbers = #tpu.dot_dimension_numbers<[1], [0], [0], [1], [0, 0, 1, 1], [], []>} : vector<8x32xbf16>, vector<32x128xbf16>, vector<8x128xf32> -> vector<8x128xf32>
    %220 = vector.extract_strided_slice %5 {offsets = [32, 0], sizes = [8, 128], strides = [1, 1]} : vector<64x128xf32> to vector<8x128xf32>
    %221 = arith.addf %220, %219 : vector<8x128xf32>
    %222 = arith.negf %221 : vector<8x128xf32>
    %223 = math.exp %222 : vector<8x128xf32>
    %cst_75 = arith.constant 1.000000e+00 : f32
    %224 = vector.broadcast %cst_75 : f32 to vector<8x128xf32>
    %225 = arith.addf %224, %223 : vector<8x128xf32>
    %226 = arith.divf %224, %225 : vector<8x128xf32>
    %227 = vector.extract_strided_slice %226 {offsets = [0, 0], sizes = [8, 32], strides = [1, 1]} : vector<8x128xf32> to vector<8x32xf32>
    %228 = vector.extract_strided_slice %226 {offsets = [0, 32], sizes = [8, 32], strides = [1, 1]} : vector<8x128xf32> to vector<8x32xf32>
    %229 = vector.extract_strided_slice %226 {offsets = [0, 96], sizes = [8, 32], strides = [1, 1]} : vector<8x128xf32> to vector<8x32xf32>
    %230 = vector.extract_strided_slice %221 {offsets = [0, 64], sizes = [8, 32], strides = [1, 1]} : vector<8x128xf32> to vector<8x32xf32>
    %231 = math.tanh %230 : vector<8x32xf32>
    %232 = arith.mulf %228, %164 : vector<8x32xf32>
    %233 = arith.mulf %227, %231 : vector<8x32xf32>
    %234 = arith.addf %232, %233 : vector<8x32xf32>
    %235 = math.tanh %234 : vector<8x32xf32>
    %236 = arith.mulf %229, %235 : vector<8x32xf32>
    %237 = arith.truncf %191 : vector<8x32xf32> to vector<8x32xbf16>
    %c0_76 = arith.constant 0 : index
    %c0_77 = arith.constant 0 : index
    %238 = vector.load %arg5[%c0_76, %c0_77] : memref<32x128xbf16, #tpu.memory_space<vmem>>, vector<32x128xbf16>
    %cst_78 = arith.constant dense<0.000000e+00> : vector<8x128xf32>
    %239 = tpu.matmul %237, %238, %cst_78 {dimension_numbers = #tpu.dot_dimension_numbers<[1], [0], [0], [1], [0, 0, 1, 1], [], []>} : vector<8x32xbf16>, vector<32x128xbf16>, vector<8x128xf32> -> vector<8x128xf32>
    %240 = arith.truncf %166 : vector<8x32xf32> to vector<8x32xbf16>
    %c0_79 = arith.constant 0 : index
    %c0_80 = arith.constant 0 : index
    %241 = vector.load %arg4[%c0_79, %c0_80] : memref<32x128xbf16, #tpu.memory_space<vmem>>, vector<32x128xbf16>
    %cst_81 = arith.constant dense<0.000000e+00> : vector<8x128xf32>
    %242 = tpu.matmul %240, %241, %cst_81 {dimension_numbers = #tpu.dot_dimension_numbers<[1], [0], [0], [1], [0, 0, 1, 1], [], []>} : vector<8x32xbf16>, vector<32x128xbf16>, vector<8x128xf32> -> vector<8x128xf32>
    %243 = arith.addf %242, %239 : vector<8x128xf32>
    %c0_82 = arith.constant 0 : index
    %c0_83 = arith.constant 0 : index
    %244 = vector.load %arg6[%c0_82, %c0_83] : memref<1x128xf32, #tpu.memory_space<vmem>>, vector<1x128xf32>
    %245 = vector.broadcast %244 : vector<1x128xf32> to vector<8x128xf32>
    %246 = arith.addf %243, %245 : vector<8x128xf32>
    %247 = arith.negf %246 : vector<8x128xf32>
    %248 = math.exp %247 : vector<8x128xf32>
    %cst_84 = arith.constant 1.000000e+00 : f32
    %249 = vector.broadcast %cst_84 : f32 to vector<8x128xf32>
    %250 = arith.addf %249, %248 : vector<8x128xf32>
    %251 = arith.divf %249, %250 : vector<8x128xf32>
    %252 = vector.extract_strided_slice %251 {offsets = [0, 0], sizes = [8, 32], strides = [1, 1]} : vector<8x128xf32> to vector<8x32xf32>
    %253 = vector.extract_strided_slice %251 {offsets = [0, 32], sizes = [8, 32], strides = [1, 1]} : vector<8x128xf32> to vector<8x32xf32>
    %254 = vector.extract_strided_slice %251 {offsets = [0, 96], sizes = [8, 32], strides = [1, 1]} : vector<8x128xf32> to vector<8x32xf32>
    %255 = vector.extract_strided_slice %246 {offsets = [0, 64], sizes = [8, 32], strides = [1, 1]} : vector<8x128xf32> to vector<8x32xf32>
    %256 = math.tanh %255 : vector<8x32xf32>
    %257 = arith.mulf %253, %189 : vector<8x32xf32>
    %258 = arith.mulf %252, %256 : vector<8x32xf32>
    %259 = arith.addf %257, %258 : vector<8x32xf32>
    %260 = math.tanh %259 : vector<8x32xf32>
    %261 = arith.mulf %254, %260 : vector<8x32xf32>
    %262 = arith.truncf %216 : vector<8x32xf32> to vector<8x32xbf16>
    %c0_85 = arith.constant 0 : index
    %c0_86 = arith.constant 0 : index
    %263 = vector.load %arg8[%c0_85, %c0_86] : memref<32x128xbf16, #tpu.memory_space<vmem>>, vector<32x128xbf16>
    %cst_87 = arith.constant dense<0.000000e+00> : vector<8x128xf32>
    %264 = tpu.matmul %262, %263, %cst_87 {dimension_numbers = #tpu.dot_dimension_numbers<[1], [0], [0], [1], [0, 0, 1, 1], [], []>} : vector<8x32xbf16>, vector<32x128xbf16>, vector<8x128xf32> -> vector<8x128xf32>
    %265 = arith.truncf %191 : vector<8x32xf32> to vector<8x32xbf16>
    %c0_88 = arith.constant 0 : index
    %c0_89 = arith.constant 0 : index
    %266 = vector.load %arg7[%c0_88, %c0_89] : memref<32x128xbf16, #tpu.memory_space<vmem>>, vector<32x128xbf16>
    %cst_90 = arith.constant dense<0.000000e+00> : vector<8x128xf32>
    %267 = tpu.matmul %265, %266, %cst_90 {dimension_numbers = #tpu.dot_dimension_numbers<[1], [0], [0], [1], [0, 0, 1, 1], [], []>} : vector<8x32xbf16>, vector<32x128xbf16>, vector<8x128xf32> -> vector<8x128xf32>
    %268 = arith.addf %267, %264 : vector<8x128xf32>
    %c0_91 = arith.constant 0 : index
    %c0_92 = arith.constant 0 : index
    %269 = vector.load %arg9[%c0_91, %c0_92] : memref<1x128xf32, #tpu.memory_space<vmem>>, vector<1x128xf32>
    %270 = vector.broadcast %269 : vector<1x128xf32> to vector<8x128xf32>
    %271 = arith.addf %268, %270 : vector<8x128xf32>
    %272 = arith.negf %271 : vector<8x128xf32>
    %273 = math.exp %272 : vector<8x128xf32>
    %cst_93 = arith.constant 1.000000e+00 : f32
    %274 = vector.broadcast %cst_93 : f32 to vector<8x128xf32>
    %275 = arith.addf %274, %273 : vector<8x128xf32>
    %276 = arith.divf %274, %275 : vector<8x128xf32>
    %277 = vector.extract_strided_slice %276 {offsets = [0, 0], sizes = [8, 32], strides = [1, 1]} : vector<8x128xf32> to vector<8x32xf32>
    %278 = vector.extract_strided_slice %276 {offsets = [0, 32], sizes = [8, 32], strides = [1, 1]} : vector<8x128xf32> to vector<8x32xf32>
    %279 = vector.extract_strided_slice %276 {offsets = [0, 96], sizes = [8, 32], strides = [1, 1]} : vector<8x128xf32> to vector<8x32xf32>
    %280 = vector.extract_strided_slice %271 {offsets = [0, 64], sizes = [8, 32], strides = [1, 1]} : vector<8x128xf32> to vector<8x32xf32>
    %281 = math.tanh %280 : vector<8x32xf32>
    %282 = arith.mulf %278, %214 : vector<8x32xf32>
    %283 = arith.mulf %277, %281 : vector<8x32xf32>
    %284 = arith.addf %282, %283 : vector<8x32xf32>
    %285 = math.tanh %284 : vector<8x32xf32>
    %286 = arith.mulf %279, %285 : vector<8x32xf32>
    %287 = arith.truncf %236 : vector<8x32xf32> to vector<8x32xbf16>
    %c0_94 = arith.constant 0 : index
    %c0_95 = arith.constant 0 : index
    %288 = vector.load %arg2[%c0_94, %c0_95] : memref<32x128xbf16, #tpu.memory_space<vmem>>, vector<32x128xbf16>
    %cst_96 = arith.constant dense<0.000000e+00> : vector<8x128xf32>
    %289 = tpu.matmul %287, %288, %cst_96 {dimension_numbers = #tpu.dot_dimension_numbers<[1], [0], [0], [1], [0, 0, 1, 1], [], []>} : vector<8x32xbf16>, vector<32x128xbf16>, vector<8x128xf32> -> vector<8x128xf32>
    %290 = vector.extract_strided_slice %5 {offsets = [40, 0], sizes = [8, 128], strides = [1, 1]} : vector<64x128xf32> to vector<8x128xf32>
    %291 = arith.addf %290, %289 : vector<8x128xf32>
    %292 = arith.negf %291 : vector<8x128xf32>
    %293 = math.exp %292 : vector<8x128xf32>
    %cst_97 = arith.constant 1.000000e+00 : f32
    %294 = vector.broadcast %cst_97 : f32 to vector<8x128xf32>
    %295 = arith.addf %294, %293 : vector<8x128xf32>
    %296 = arith.divf %294, %295 : vector<8x128xf32>
    %297 = vector.extract_strided_slice %296 {offsets = [0, 0], sizes = [8, 32], strides = [1, 1]} : vector<8x128xf32> to vector<8x32xf32>
    %298 = vector.extract_strided_slice %296 {offsets = [0, 32], sizes = [8, 32], strides = [1, 1]} : vector<8x128xf32> to vector<8x32xf32>
    %299 = vector.extract_strided_slice %296 {offsets = [0, 96], sizes = [8, 32], strides = [1, 1]} : vector<8x128xf32> to vector<8x32xf32>
    %300 = vector.extract_strided_slice %291 {offsets = [0, 64], sizes = [8, 32], strides = [1, 1]} : vector<8x128xf32> to vector<8x32xf32>
    %301 = math.tanh %300 : vector<8x32xf32>
    %302 = arith.mulf %298, %234 : vector<8x32xf32>
    %303 = arith.mulf %297, %301 : vector<8x32xf32>
    %304 = arith.addf %302, %303 : vector<8x32xf32>
    %305 = math.tanh %304 : vector<8x32xf32>
    %306 = arith.mulf %299, %305 : vector<8x32xf32>
    %307 = arith.truncf %261 : vector<8x32xf32> to vector<8x32xbf16>
    %c0_98 = arith.constant 0 : index
    %c0_99 = arith.constant 0 : index
    %308 = vector.load %arg5[%c0_98, %c0_99] : memref<32x128xbf16, #tpu.memory_space<vmem>>, vector<32x128xbf16>
    %cst_100 = arith.constant dense<0.000000e+00> : vector<8x128xf32>
    %309 = tpu.matmul %307, %308, %cst_100 {dimension_numbers = #tpu.dot_dimension_numbers<[1], [0], [0], [1], [0, 0, 1, 1], [], []>} : vector<8x32xbf16>, vector<32x128xbf16>, vector<8x128xf32> -> vector<8x128xf32>
    %310 = arith.truncf %236 : vector<8x32xf32> to vector<8x32xbf16>
    %c0_101 = arith.constant 0 : index
    %c0_102 = arith.constant 0 : index
    %311 = vector.load %arg4[%c0_101, %c0_102] : memref<32x128xbf16, #tpu.memory_space<vmem>>, vector<32x128xbf16>
    %cst_103 = arith.constant dense<0.000000e+00> : vector<8x128xf32>
    %312 = tpu.matmul %310, %311, %cst_103 {dimension_numbers = #tpu.dot_dimension_numbers<[1], [0], [0], [1], [0, 0, 1, 1], [], []>} : vector<8x32xbf16>, vector<32x128xbf16>, vector<8x128xf32> -> vector<8x128xf32>
    %313 = arith.addf %312, %309 : vector<8x128xf32>
    %c0_104 = arith.constant 0 : index
    %c0_105 = arith.constant 0 : index
    %314 = vector.load %arg6[%c0_104, %c0_105] : memref<1x128xf32, #tpu.memory_space<vmem>>, vector<1x128xf32>
    %315 = vector.broadcast %314 : vector<1x128xf32> to vector<8x128xf32>
    %316 = arith.addf %313, %315 : vector<8x128xf32>
    %317 = arith.negf %316 : vector<8x128xf32>
    %318 = math.exp %317 : vector<8x128xf32>
    %cst_106 = arith.constant 1.000000e+00 : f32
    %319 = vector.broadcast %cst_106 : f32 to vector<8x128xf32>
    %320 = arith.addf %319, %318 : vector<8x128xf32>
    %321 = arith.divf %319, %320 : vector<8x128xf32>
    %322 = vector.extract_strided_slice %321 {offsets = [0, 0], sizes = [8, 32], strides = [1, 1]} : vector<8x128xf32> to vector<8x32xf32>
    %323 = vector.extract_strided_slice %321 {offsets = [0, 32], sizes = [8, 32], strides = [1, 1]} : vector<8x128xf32> to vector<8x32xf32>
    %324 = vector.extract_strided_slice %321 {offsets = [0, 96], sizes = [8, 32], strides = [1, 1]} : vector<8x128xf32> to vector<8x32xf32>
    %325 = vector.extract_strided_slice %316 {offsets = [0, 64], sizes = [8, 32], strides = [1, 1]} : vector<8x128xf32> to vector<8x32xf32>
    %326 = math.tanh %325 : vector<8x32xf32>
    %327 = arith.mulf %323, %259 : vector<8x32xf32>
    %328 = arith.mulf %322, %326 : vector<8x32xf32>
    %329 = arith.addf %327, %328 : vector<8x32xf32>
    %330 = math.tanh %329 : vector<8x32xf32>
    %331 = arith.mulf %324, %330 : vector<8x32xf32>
    %332 = arith.truncf %286 : vector<8x32xf32> to vector<8x32xbf16>
    %c0_107 = arith.constant 0 : index
    %c0_108 = arith.constant 0 : index
    %333 = vector.load %arg8[%c0_107, %c0_108] : memref<32x128xbf16, #tpu.memory_space<vmem>>, vector<32x128xbf16>
    %cst_109 = arith.constant dense<0.000000e+00> : vector<8x128xf32>
    %334 = tpu.matmul %332, %333, %cst_109 {dimension_numbers = #tpu.dot_dimension_numbers<[1], [0], [0], [1], [0, 0, 1, 1], [], []>} : vector<8x32xbf16>, vector<32x128xbf16>, vector<8x128xf32> -> vector<8x128xf32>
    %335 = arith.truncf %261 : vector<8x32xf32> to vector<8x32xbf16>
    %c0_110 = arith.constant 0 : index
    %c0_111 = arith.constant 0 : index
    %336 = vector.load %arg7[%c0_110, %c0_111] : memref<32x128xbf16, #tpu.memory_space<vmem>>, vector<32x128xbf16>
    %cst_112 = arith.constant dense<0.000000e+00> : vector<8x128xf32>
    %337 = tpu.matmul %335, %336, %cst_112 {dimension_numbers = #tpu.dot_dimension_numbers<[1], [0], [0], [1], [0, 0, 1, 1], [], []>} : vector<8x32xbf16>, vector<32x128xbf16>, vector<8x128xf32> -> vector<8x128xf32>
    %338 = arith.addf %337, %334 : vector<8x128xf32>
    %c0_113 = arith.constant 0 : index
    %c0_114 = arith.constant 0 : index
    %339 = vector.load %arg9[%c0_113, %c0_114] : memref<1x128xf32, #tpu.memory_space<vmem>>, vector<1x128xf32>
    %340 = vector.broadcast %339 : vector<1x128xf32> to vector<8x128xf32>
    %341 = arith.addf %338, %340 : vector<8x128xf32>
    %342 = arith.negf %341 : vector<8x128xf32>
    %343 = math.exp %342 : vector<8x128xf32>
    %cst_115 = arith.constant 1.000000e+00 : f32
    %344 = vector.broadcast %cst_115 : f32 to vector<8x128xf32>
    %345 = arith.addf %344, %343 : vector<8x128xf32>
    %346 = arith.divf %344, %345 : vector<8x128xf32>
    %347 = vector.extract_strided_slice %346 {offsets = [0, 0], sizes = [8, 32], strides = [1, 1]} : vector<8x128xf32> to vector<8x32xf32>
    %348 = vector.extract_strided_slice %346 {offsets = [0, 32], sizes = [8, 32], strides = [1, 1]} : vector<8x128xf32> to vector<8x32xf32>
    %349 = vector.extract_strided_slice %346 {offsets = [0, 96], sizes = [8, 32], strides = [1, 1]} : vector<8x128xf32> to vector<8x32xf32>
    %350 = vector.extract_strided_slice %341 {offsets = [0, 64], sizes = [8, 32], strides = [1, 1]} : vector<8x128xf32> to vector<8x32xf32>
    %351 = math.tanh %350 : vector<8x32xf32>
    %352 = arith.mulf %348, %284 : vector<8x32xf32>
    %353 = arith.mulf %347, %351 : vector<8x32xf32>
    %354 = arith.addf %352, %353 : vector<8x32xf32>
    %355 = math.tanh %354 : vector<8x32xf32>
    %356 = arith.mulf %349, %355 : vector<8x32xf32>
    %357 = arith.truncf %306 : vector<8x32xf32> to vector<8x32xbf16>
    %c0_116 = arith.constant 0 : index
    %c0_117 = arith.constant 0 : index
    %358 = vector.load %arg2[%c0_116, %c0_117] : memref<32x128xbf16, #tpu.memory_space<vmem>>, vector<32x128xbf16>
    %cst_118 = arith.constant dense<0.000000e+00> : vector<8x128xf32>
    %359 = tpu.matmul %357, %358, %cst_118 {dimension_numbers = #tpu.dot_dimension_numbers<[1], [0], [0], [1], [0, 0, 1, 1], [], []>} : vector<8x32xbf16>, vector<32x128xbf16>, vector<8x128xf32> -> vector<8x128xf32>
    %360 = vector.extract_strided_slice %5 {offsets = [48, 0], sizes = [8, 128], strides = [1, 1]} : vector<64x128xf32> to vector<8x128xf32>
    %361 = arith.addf %360, %359 : vector<8x128xf32>
    %362 = arith.negf %361 : vector<8x128xf32>
    %363 = math.exp %362 : vector<8x128xf32>
    %cst_119 = arith.constant 1.000000e+00 : f32
    %364 = vector.broadcast %cst_119 : f32 to vector<8x128xf32>
    %365 = arith.addf %364, %363 : vector<8x128xf32>
    %366 = arith.divf %364, %365 : vector<8x128xf32>
    %367 = vector.extract_strided_slice %366 {offsets = [0, 0], sizes = [8, 32], strides = [1, 1]} : vector<8x128xf32> to vector<8x32xf32>
    %368 = vector.extract_strided_slice %366 {offsets = [0, 32], sizes = [8, 32], strides = [1, 1]} : vector<8x128xf32> to vector<8x32xf32>
    %369 = vector.extract_strided_slice %366 {offsets = [0, 96], sizes = [8, 32], strides = [1, 1]} : vector<8x128xf32> to vector<8x32xf32>
    %370 = vector.extract_strided_slice %361 {offsets = [0, 64], sizes = [8, 32], strides = [1, 1]} : vector<8x128xf32> to vector<8x32xf32>
    %371 = math.tanh %370 : vector<8x32xf32>
    %372 = arith.mulf %368, %304 : vector<8x32xf32>
    %373 = arith.mulf %367, %371 : vector<8x32xf32>
    %374 = arith.addf %372, %373 : vector<8x32xf32>
    %375 = math.tanh %374 : vector<8x32xf32>
    %376 = arith.mulf %369, %375 : vector<8x32xf32>
    %377 = arith.truncf %331 : vector<8x32xf32> to vector<8x32xbf16>
    %c0_120 = arith.constant 0 : index
    %c0_121 = arith.constant 0 : index
    %378 = vector.load %arg5[%c0_120, %c0_121] : memref<32x128xbf16, #tpu.memory_space<vmem>>, vector<32x128xbf16>
    %cst_122 = arith.constant dense<0.000000e+00> : vector<8x128xf32>
    %379 = tpu.matmul %377, %378, %cst_122 {dimension_numbers = #tpu.dot_dimension_numbers<[1], [0], [0], [1], [0, 0, 1, 1], [], []>} : vector<8x32xbf16>, vector<32x128xbf16>, vector<8x128xf32> -> vector<8x128xf32>
    %380 = arith.truncf %306 : vector<8x32xf32> to vector<8x32xbf16>
    %c0_123 = arith.constant 0 : index
    %c0_124 = arith.constant 0 : index
    %381 = vector.load %arg4[%c0_123, %c0_124] : memref<32x128xbf16, #tpu.memory_space<vmem>>, vector<32x128xbf16>
    %cst_125 = arith.constant dense<0.000000e+00> : vector<8x128xf32>
    %382 = tpu.matmul %380, %381, %cst_125 {dimension_numbers = #tpu.dot_dimension_numbers<[1], [0], [0], [1], [0, 0, 1, 1], [], []>} : vector<8x32xbf16>, vector<32x128xbf16>, vector<8x128xf32> -> vector<8x128xf32>
    %383 = arith.addf %382, %379 : vector<8x128xf32>
    %c0_126 = arith.constant 0 : index
    %c0_127 = arith.constant 0 : index
    %384 = vector.load %arg6[%c0_126, %c0_127] : memref<1x128xf32, #tpu.memory_space<vmem>>, vector<1x128xf32>
    %385 = vector.broadcast %384 : vector<1x128xf32> to vector<8x128xf32>
    %386 = arith.addf %383, %385 : vector<8x128xf32>
    %387 = arith.negf %386 : vector<8x128xf32>
    %388 = math.exp %387 : vector<8x128xf32>
    %cst_128 = arith.constant 1.000000e+00 : f32
    %389 = vector.broadcast %cst_128 : f32 to vector<8x128xf32>
    %390 = arith.addf %389, %388 : vector<8x128xf32>
    %391 = arith.divf %389, %390 : vector<8x128xf32>
    %392 = vector.extract_strided_slice %391 {offsets = [0, 0], sizes = [8, 32], strides = [1, 1]} : vector<8x128xf32> to vector<8x32xf32>
    %393 = vector.extract_strided_slice %391 {offsets = [0, 32], sizes = [8, 32], strides = [1, 1]} : vector<8x128xf32> to vector<8x32xf32>
    %394 = vector.extract_strided_slice %391 {offsets = [0, 96], sizes = [8, 32], strides = [1, 1]} : vector<8x128xf32> to vector<8x32xf32>
    %395 = vector.extract_strided_slice %386 {offsets = [0, 64], sizes = [8, 32], strides = [1, 1]} : vector<8x128xf32> to vector<8x32xf32>
    %396 = math.tanh %395 : vector<8x32xf32>
    %397 = arith.mulf %393, %329 : vector<8x32xf32>
    %398 = arith.mulf %392, %396 : vector<8x32xf32>
    %399 = arith.addf %397, %398 : vector<8x32xf32>
    %400 = math.tanh %399 : vector<8x32xf32>
    %401 = arith.mulf %394, %400 : vector<8x32xf32>
    %402 = arith.truncf %356 : vector<8x32xf32> to vector<8x32xbf16>
    %c0_129 = arith.constant 0 : index
    %c0_130 = arith.constant 0 : index
    %403 = vector.load %arg8[%c0_129, %c0_130] : memref<32x128xbf16, #tpu.memory_space<vmem>>, vector<32x128xbf16>
    %cst_131 = arith.constant dense<0.000000e+00> : vector<8x128xf32>
    %404 = tpu.matmul %402, %403, %cst_131 {dimension_numbers = #tpu.dot_dimension_numbers<[1], [0], [0], [1], [0, 0, 1, 1], [], []>} : vector<8x32xbf16>, vector<32x128xbf16>, vector<8x128xf32> -> vector<8x128xf32>
    %405 = arith.truncf %331 : vector<8x32xf32> to vector<8x32xbf16>
    %c0_132 = arith.constant 0 : index
    %c0_133 = arith.constant 0 : index
    %406 = vector.load %arg7[%c0_132, %c0_133] : memref<32x128xbf16, #tpu.memory_space<vmem>>, vector<32x128xbf16>
    %cst_134 = arith.constant dense<0.000000e+00> : vector<8x128xf32>
    %407 = tpu.matmul %405, %406, %cst_134 {dimension_numbers = #tpu.dot_dimension_numbers<[1], [0], [0], [1], [0, 0, 1, 1], [], []>} : vector<8x32xbf16>, vector<32x128xbf16>, vector<8x128xf32> -> vector<8x128xf32>
    %408 = arith.addf %407, %404 : vector<8x128xf32>
    %c0_135 = arith.constant 0 : index
    %c0_136 = arith.constant 0 : index
    %409 = vector.load %arg9[%c0_135, %c0_136] : memref<1x128xf32, #tpu.memory_space<vmem>>, vector<1x128xf32>
    %410 = vector.broadcast %409 : vector<1x128xf32> to vector<8x128xf32>
    %411 = arith.addf %408, %410 : vector<8x128xf32>
    %412 = arith.negf %411 : vector<8x128xf32>
    %413 = math.exp %412 : vector<8x128xf32>
    %cst_137 = arith.constant 1.000000e+00 : f32
    %414 = vector.broadcast %cst_137 : f32 to vector<8x128xf32>
    %415 = arith.addf %414, %413 : vector<8x128xf32>
    %416 = arith.divf %414, %415 : vector<8x128xf32>
    %417 = vector.extract_strided_slice %416 {offsets = [0, 0], sizes = [8, 32], strides = [1, 1]} : vector<8x128xf32> to vector<8x32xf32>
    %418 = vector.extract_strided_slice %416 {offsets = [0, 32], sizes = [8, 32], strides = [1, 1]} : vector<8x128xf32> to vector<8x32xf32>
    %419 = vector.extract_strided_slice %416 {offsets = [0, 96], sizes = [8, 32], strides = [1, 1]} : vector<8x128xf32> to vector<8x32xf32>
    %420 = vector.extract_strided_slice %411 {offsets = [0, 64], sizes = [8, 32], strides = [1, 1]} : vector<8x128xf32> to vector<8x32xf32>
    %421 = math.tanh %420 : vector<8x32xf32>
    %422 = arith.mulf %418, %354 : vector<8x32xf32>
    %423 = arith.mulf %417, %421 : vector<8x32xf32>
    %424 = arith.addf %422, %423 : vector<8x32xf32>
    %425 = math.tanh %424 : vector<8x32xf32>
    %426 = arith.mulf %419, %425 : vector<8x32xf32>
    %427 = arith.truncf %376 : vector<8x32xf32> to vector<8x32xbf16>
    %c0_138 = arith.constant 0 : index
    %c0_139 = arith.constant 0 : index
    %428 = vector.load %arg2[%c0_138, %c0_139] : memref<32x128xbf16, #tpu.memory_space<vmem>>, vector<32x128xbf16>
    %cst_140 = arith.constant dense<0.000000e+00> : vector<8x128xf32>
    %429 = tpu.matmul %427, %428, %cst_140 {dimension_numbers = #tpu.dot_dimension_numbers<[1], [0], [0], [1], [0, 0, 1, 1], [], []>} : vector<8x32xbf16>, vector<32x128xbf16>, vector<8x128xf32> -> vector<8x128xf32>
    %430 = vector.extract_strided_slice %5 {offsets = [56, 0], sizes = [8, 128], strides = [1, 1]} : vector<64x128xf32> to vector<8x128xf32>
    %431 = arith.addf %430, %429 : vector<8x128xf32>
    %432 = arith.negf %431 : vector<8x128xf32>
    %433 = math.exp %432 : vector<8x128xf32>
    %cst_141 = arith.constant 1.000000e+00 : f32
    %434 = vector.broadcast %cst_141 : f32 to vector<8x128xf32>
    %435 = arith.addf %434, %433 : vector<8x128xf32>
    %436 = arith.divf %434, %435 : vector<8x128xf32>
    %437 = vector.extract_strided_slice %436 {offsets = [0, 0], sizes = [8, 32], strides = [1, 1]} : vector<8x128xf32> to vector<8x32xf32>
    %438 = vector.extract_strided_slice %436 {offsets = [0, 32], sizes = [8, 32], strides = [1, 1]} : vector<8x128xf32> to vector<8x32xf32>
    %439 = vector.extract_strided_slice %436 {offsets = [0, 96], sizes = [8, 32], strides = [1, 1]} : vector<8x128xf32> to vector<8x32xf32>
    %440 = vector.extract_strided_slice %431 {offsets = [0, 64], sizes = [8, 32], strides = [1, 1]} : vector<8x128xf32> to vector<8x32xf32>
    %441 = math.tanh %440 : vector<8x32xf32>
    %442 = arith.mulf %438, %374 : vector<8x32xf32>
    %443 = arith.mulf %437, %441 : vector<8x32xf32>
    %444 = arith.addf %442, %443 : vector<8x32xf32>
    %445 = math.tanh %444 : vector<8x32xf32>
    %446 = arith.mulf %439, %445 : vector<8x32xf32>
    %447 = arith.truncf %401 : vector<8x32xf32> to vector<8x32xbf16>
    %c0_142 = arith.constant 0 : index
    %c0_143 = arith.constant 0 : index
    %448 = vector.load %arg5[%c0_142, %c0_143] : memref<32x128xbf16, #tpu.memory_space<vmem>>, vector<32x128xbf16>
    %cst_144 = arith.constant dense<0.000000e+00> : vector<8x128xf32>
    %449 = tpu.matmul %447, %448, %cst_144 {dimension_numbers = #tpu.dot_dimension_numbers<[1], [0], [0], [1], [0, 0, 1, 1], [], []>} : vector<8x32xbf16>, vector<32x128xbf16>, vector<8x128xf32> -> vector<8x128xf32>
    %450 = arith.truncf %376 : vector<8x32xf32> to vector<8x32xbf16>
    %c0_145 = arith.constant 0 : index
    %c0_146 = arith.constant 0 : index
    %451 = vector.load %arg4[%c0_145, %c0_146] : memref<32x128xbf16, #tpu.memory_space<vmem>>, vector<32x128xbf16>
    %cst_147 = arith.constant dense<0.000000e+00> : vector<8x128xf32>
    %452 = tpu.matmul %450, %451, %cst_147 {dimension_numbers = #tpu.dot_dimension_numbers<[1], [0], [0], [1], [0, 0, 1, 1], [], []>} : vector<8x32xbf16>, vector<32x128xbf16>, vector<8x128xf32> -> vector<8x128xf32>
    %453 = arith.addf %452, %449 : vector<8x128xf32>
    %c0_148 = arith.constant 0 : index
    %c0_149 = arith.constant 0 : index
    %454 = vector.load %arg6[%c0_148, %c0_149] : memref<1x128xf32, #tpu.memory_space<vmem>>, vector<1x128xf32>
    %455 = vector.broadcast %454 : vector<1x128xf32> to vector<8x128xf32>
    %456 = arith.addf %453, %455 : vector<8x128xf32>
    %457 = arith.negf %456 : vector<8x128xf32>
    %458 = math.exp %457 : vector<8x128xf32>
    %cst_150 = arith.constant 1.000000e+00 : f32
    %459 = vector.broadcast %cst_150 : f32 to vector<8x128xf32>
    %460 = arith.addf %459, %458 : vector<8x128xf32>
    %461 = arith.divf %459, %460 : vector<8x128xf32>
    %462 = vector.extract_strided_slice %461 {offsets = [0, 0], sizes = [8, 32], strides = [1, 1]} : vector<8x128xf32> to vector<8x32xf32>
    %463 = vector.extract_strided_slice %461 {offsets = [0, 32], sizes = [8, 32], strides = [1, 1]} : vector<8x128xf32> to vector<8x32xf32>
    %464 = vector.extract_strided_slice %461 {offsets = [0, 96], sizes = [8, 32], strides = [1, 1]} : vector<8x128xf32> to vector<8x32xf32>
    %465 = vector.extract_strided_slice %456 {offsets = [0, 64], sizes = [8, 32], strides = [1, 1]} : vector<8x128xf32> to vector<8x32xf32>
    %466 = math.tanh %465 : vector<8x32xf32>
    %467 = arith.mulf %463, %399 : vector<8x32xf32>
    %468 = arith.mulf %462, %466 : vector<8x32xf32>
    %469 = arith.addf %467, %468 : vector<8x32xf32>
    %470 = math.tanh %469 : vector<8x32xf32>
    %471 = arith.mulf %464, %470 : vector<8x32xf32>
    %472 = arith.truncf %426 : vector<8x32xf32> to vector<8x32xbf16>
    %c0_151 = arith.constant 0 : index
    %c0_152 = arith.constant 0 : index
    %473 = vector.load %arg8[%c0_151, %c0_152] : memref<32x128xbf16, #tpu.memory_space<vmem>>, vector<32x128xbf16>
    %cst_153 = arith.constant dense<0.000000e+00> : vector<8x128xf32>
    %474 = tpu.matmul %472, %473, %cst_153 {dimension_numbers = #tpu.dot_dimension_numbers<[1], [0], [0], [1], [0, 0, 1, 1], [], []>} : vector<8x32xbf16>, vector<32x128xbf16>, vector<8x128xf32> -> vector<8x128xf32>
    %475 = arith.truncf %401 : vector<8x32xf32> to vector<8x32xbf16>
    %c0_154 = arith.constant 0 : index
    %c0_155 = arith.constant 0 : index
    %476 = vector.load %arg7[%c0_154, %c0_155] : memref<32x128xbf16, #tpu.memory_space<vmem>>, vector<32x128xbf16>
    %cst_156 = arith.constant dense<0.000000e+00> : vector<8x128xf32>
    %477 = tpu.matmul %475, %476, %cst_156 {dimension_numbers = #tpu.dot_dimension_numbers<[1], [0], [0], [1], [0, 0, 1, 1], [], []>} : vector<8x32xbf16>, vector<32x128xbf16>, vector<8x128xf32> -> vector<8x128xf32>
    %478 = arith.addf %477, %474 : vector<8x128xf32>
    %c0_157 = arith.constant 0 : index
    %c0_158 = arith.constant 0 : index
    %479 = vector.load %arg9[%c0_157, %c0_158] : memref<1x128xf32, #tpu.memory_space<vmem>>, vector<1x128xf32>
    %480 = vector.broadcast %479 : vector<1x128xf32> to vector<8x128xf32>
    %481 = arith.addf %478, %480 : vector<8x128xf32>
    %482 = arith.negf %481 : vector<8x128xf32>
    %483 = math.exp %482 : vector<8x128xf32>
    %cst_159 = arith.constant 1.000000e+00 : f32
    %484 = vector.broadcast %cst_159 : f32 to vector<8x128xf32>
    %485 = arith.addf %484, %483 : vector<8x128xf32>
    %486 = arith.divf %484, %485 : vector<8x128xf32>
    %487 = vector.extract_strided_slice %486 {offsets = [0, 0], sizes = [8, 32], strides = [1, 1]} : vector<8x128xf32> to vector<8x32xf32>
    %488 = vector.extract_strided_slice %486 {offsets = [0, 32], sizes = [8, 32], strides = [1, 1]} : vector<8x128xf32> to vector<8x32xf32>
    %489 = vector.extract_strided_slice %486 {offsets = [0, 96], sizes = [8, 32], strides = [1, 1]} : vector<8x128xf32> to vector<8x32xf32>
    %490 = vector.extract_strided_slice %481 {offsets = [0, 64], sizes = [8, 32], strides = [1, 1]} : vector<8x128xf32> to vector<8x32xf32>
    %491 = math.tanh %490 : vector<8x32xf32>
    %492 = arith.mulf %488, %424 : vector<8x32xf32>
    %493 = arith.mulf %487, %491 : vector<8x32xf32>
    %494 = arith.addf %492, %493 : vector<8x32xf32>
    %495 = math.tanh %494 : vector<8x32xf32>
    %496 = arith.mulf %489, %495 : vector<8x32xf32>
    %497 = arith.truncf %471 : vector<8x32xf32> to vector<8x32xbf16>
    %c0_160 = arith.constant 0 : index
    %c0_161 = arith.constant 0 : index
    %498 = vector.load %arg5[%c0_160, %c0_161] : memref<32x128xbf16, #tpu.memory_space<vmem>>, vector<32x128xbf16>
    %cst_162 = arith.constant dense<0.000000e+00> : vector<8x128xf32>
    %499 = tpu.matmul %497, %498, %cst_162 {dimension_numbers = #tpu.dot_dimension_numbers<[1], [0], [0], [1], [0, 0, 1, 1], [], []>} : vector<8x32xbf16>, vector<32x128xbf16>, vector<8x128xf32> -> vector<8x128xf32>
    %500 = arith.truncf %446 : vector<8x32xf32> to vector<8x32xbf16>
    %c0_163 = arith.constant 0 : index
    %c0_164 = arith.constant 0 : index
    %501 = vector.load %arg4[%c0_163, %c0_164] : memref<32x128xbf16, #tpu.memory_space<vmem>>, vector<32x128xbf16>
    %cst_165 = arith.constant dense<0.000000e+00> : vector<8x128xf32>
    %502 = tpu.matmul %500, %501, %cst_165 {dimension_numbers = #tpu.dot_dimension_numbers<[1], [0], [0], [1], [0, 0, 1, 1], [], []>} : vector<8x32xbf16>, vector<32x128xbf16>, vector<8x128xf32> -> vector<8x128xf32>
    %503 = arith.addf %502, %499 : vector<8x128xf32>
    %c0_166 = arith.constant 0 : index
    %c0_167 = arith.constant 0 : index
    %504 = vector.load %arg6[%c0_166, %c0_167] : memref<1x128xf32, #tpu.memory_space<vmem>>, vector<1x128xf32>
    %505 = vector.broadcast %504 : vector<1x128xf32> to vector<8x128xf32>
    %506 = arith.addf %503, %505 : vector<8x128xf32>
    %507 = arith.negf %506 : vector<8x128xf32>
    %508 = math.exp %507 : vector<8x128xf32>
    %cst_168 = arith.constant 1.000000e+00 : f32
    %509 = vector.broadcast %cst_168 : f32 to vector<8x128xf32>
    %510 = arith.addf %509, %508 : vector<8x128xf32>
    %511 = arith.divf %509, %510 : vector<8x128xf32>
    %512 = vector.extract_strided_slice %511 {offsets = [0, 0], sizes = [8, 32], strides = [1, 1]} : vector<8x128xf32> to vector<8x32xf32>
    %513 = vector.extract_strided_slice %511 {offsets = [0, 32], sizes = [8, 32], strides = [1, 1]} : vector<8x128xf32> to vector<8x32xf32>
    %514 = vector.extract_strided_slice %511 {offsets = [0, 96], sizes = [8, 32], strides = [1, 1]} : vector<8x128xf32> to vector<8x32xf32>
    %515 = vector.extract_strided_slice %506 {offsets = [0, 64], sizes = [8, 32], strides = [1, 1]} : vector<8x128xf32> to vector<8x32xf32>
    %516 = math.tanh %515 : vector<8x32xf32>
    %517 = arith.mulf %513, %469 : vector<8x32xf32>
    %518 = arith.mulf %512, %516 : vector<8x32xf32>
    %519 = arith.addf %517, %518 : vector<8x32xf32>
    %520 = math.tanh %519 : vector<8x32xf32>
    %521 = arith.mulf %514, %520 : vector<8x32xf32>
    %522 = arith.truncf %496 : vector<8x32xf32> to vector<8x32xbf16>
    %c0_169 = arith.constant 0 : index
    %c0_170 = arith.constant 0 : index
    %523 = vector.load %arg8[%c0_169, %c0_170] : memref<32x128xbf16, #tpu.memory_space<vmem>>, vector<32x128xbf16>
    %cst_171 = arith.constant dense<0.000000e+00> : vector<8x128xf32>
    %524 = tpu.matmul %522, %523, %cst_171 {dimension_numbers = #tpu.dot_dimension_numbers<[1], [0], [0], [1], [0, 0, 1, 1], [], []>} : vector<8x32xbf16>, vector<32x128xbf16>, vector<8x128xf32> -> vector<8x128xf32>
    %525 = arith.truncf %471 : vector<8x32xf32> to vector<8x32xbf16>
    %c0_172 = arith.constant 0 : index
    %c0_173 = arith.constant 0 : index
    %526 = vector.load %arg7[%c0_172, %c0_173] : memref<32x128xbf16, #tpu.memory_space<vmem>>, vector<32x128xbf16>
    %cst_174 = arith.constant dense<0.000000e+00> : vector<8x128xf32>
    %527 = tpu.matmul %525, %526, %cst_174 {dimension_numbers = #tpu.dot_dimension_numbers<[1], [0], [0], [1], [0, 0, 1, 1], [], []>} : vector<8x32xbf16>, vector<32x128xbf16>, vector<8x128xf32> -> vector<8x128xf32>
    %528 = arith.addf %527, %524 : vector<8x128xf32>
    %c0_175 = arith.constant 0 : index
    %c0_176 = arith.constant 0 : index
    %529 = vector.load %arg9[%c0_175, %c0_176] : memref<1x128xf32, #tpu.memory_space<vmem>>, vector<1x128xf32>
    %530 = vector.broadcast %529 : vector<1x128xf32> to vector<8x128xf32>
    %531 = arith.addf %528, %530 : vector<8x128xf32>
    %532 = arith.negf %531 : vector<8x128xf32>
    %533 = math.exp %532 : vector<8x128xf32>
    %cst_177 = arith.constant 1.000000e+00 : f32
    %534 = vector.broadcast %cst_177 : f32 to vector<8x128xf32>
    %535 = arith.addf %534, %533 : vector<8x128xf32>
    %536 = arith.divf %534, %535 : vector<8x128xf32>
    %537 = vector.extract_strided_slice %536 {offsets = [0, 0], sizes = [8, 32], strides = [1, 1]} : vector<8x128xf32> to vector<8x32xf32>
    %538 = vector.extract_strided_slice %536 {offsets = [0, 32], sizes = [8, 32], strides = [1, 1]} : vector<8x128xf32> to vector<8x32xf32>
    %539 = vector.extract_strided_slice %536 {offsets = [0, 96], sizes = [8, 32], strides = [1, 1]} : vector<8x128xf32> to vector<8x32xf32>
    %540 = vector.extract_strided_slice %531 {offsets = [0, 64], sizes = [8, 32], strides = [1, 1]} : vector<8x128xf32> to vector<8x32xf32>
    %541 = math.tanh %540 : vector<8x32xf32>
    %542 = arith.mulf %538, %494 : vector<8x32xf32>
    %543 = arith.mulf %537, %541 : vector<8x32xf32>
    %544 = arith.addf %542, %543 : vector<8x32xf32>
    %545 = math.tanh %544 : vector<8x32xf32>
    %546 = arith.mulf %539, %545 : vector<8x32xf32>
    %547 = arith.truncf %546 : vector<8x32xf32> to vector<8x32xbf16>
    %c0_178 = arith.constant 0 : index
    %c0_179 = arith.constant 0 : index
    %548 = vector.load %arg8[%c0_178, %c0_179] : memref<32x128xbf16, #tpu.memory_space<vmem>>, vector<32x128xbf16>
    %cst_180 = arith.constant dense<0.000000e+00> : vector<8x128xf32>
    %549 = tpu.matmul %547, %548, %cst_180 {dimension_numbers = #tpu.dot_dimension_numbers<[1], [0], [0], [1], [0, 0, 1, 1], [], []>} : vector<8x32xbf16>, vector<32x128xbf16>, vector<8x128xf32> -> vector<8x128xf32>
    %550 = arith.truncf %521 : vector<8x32xf32> to vector<8x32xbf16>
    %c0_181 = arith.constant 0 : index
    %c0_182 = arith.constant 0 : index
    %551 = vector.load %arg7[%c0_181, %c0_182] : memref<32x128xbf16, #tpu.memory_space<vmem>>, vector<32x128xbf16>
    %cst_183 = arith.constant dense<0.000000e+00> : vector<8x128xf32>
    %552 = tpu.matmul %550, %551, %cst_183 {dimension_numbers = #tpu.dot_dimension_numbers<[1], [0], [0], [1], [0, 0, 1, 1], [], []>} : vector<8x32xbf16>, vector<32x128xbf16>, vector<8x128xf32> -> vector<8x128xf32>
    %553 = arith.addf %552, %549 : vector<8x128xf32>
    %c0_184 = arith.constant 0 : index
    %c0_185 = arith.constant 0 : index
    %554 = vector.load %arg9[%c0_184, %c0_185] : memref<1x128xf32, #tpu.memory_space<vmem>>, vector<1x128xf32>
    %555 = vector.broadcast %554 : vector<1x128xf32> to vector<8x128xf32>
    %556 = arith.addf %553, %555 : vector<8x128xf32>
    %557 = arith.negf %556 : vector<8x128xf32>
    %558 = math.exp %557 : vector<8x128xf32>
    %cst_186 = arith.constant 1.000000e+00 : f32
    %559 = vector.broadcast %cst_186 : f32 to vector<8x128xf32>
    %560 = arith.addf %559, %558 : vector<8x128xf32>
    %561 = arith.divf %559, %560 : vector<8x128xf32>
    %562 = vector.extract_strided_slice %561 {offsets = [0, 0], sizes = [8, 32], strides = [1, 1]} : vector<8x128xf32> to vector<8x32xf32>
    %563 = vector.extract_strided_slice %561 {offsets = [0, 32], sizes = [8, 32], strides = [1, 1]} : vector<8x128xf32> to vector<8x32xf32>
    %564 = vector.extract_strided_slice %561 {offsets = [0, 96], sizes = [8, 32], strides = [1, 1]} : vector<8x128xf32> to vector<8x32xf32>
    %565 = vector.extract_strided_slice %556 {offsets = [0, 64], sizes = [8, 32], strides = [1, 1]} : vector<8x128xf32> to vector<8x32xf32>
    %566 = math.tanh %565 : vector<8x32xf32>
    %567 = arith.mulf %563, %544 : vector<8x32xf32>
    %568 = arith.mulf %562, %566 : vector<8x32xf32>
    %569 = arith.addf %567, %568 : vector<8x32xf32>
    %570 = math.tanh %569 : vector<8x32xf32>
    %571 = arith.mulf %564, %570 : vector<8x32xf32>
    %cst_187 = arith.constant dense<0.000000e+00> : vector<8xf32>
    %572 = vector.multi_reduction <add>, %571, %cst_187 [1] : vector<8x32xf32> to vector<8xf32>
    %573 = vector.shape_cast %572 : vector<8xf32> to vector<8x1xf32>
    %cst_188 = arith.constant 3.200000e+01 : f32
    %574 = vector.broadcast %cst_188 : f32 to vector<8x1xf32>
    %575 = arith.divf %573, %574 : vector<8x1xf32>
    %576 = vector.broadcast %575 : vector<8x1xf32> to vector<8x32xf32>
    %577 = arith.subf %571, %576 : vector<8x32xf32>
    %578 = arith.mulf %577, %577 : vector<8x32xf32>
    %cst_189 = arith.constant dense<0.000000e+00> : vector<8xf32>
    %579 = vector.multi_reduction <add>, %578, %cst_189 [1] : vector<8x32xf32> to vector<8xf32>
    %580 = vector.shape_cast %579 : vector<8xf32> to vector<8x1xf32>
    %cst_190 = arith.constant 3.200000e+01 : f32
    %581 = vector.broadcast %cst_190 : f32 to vector<8x1xf32>
    %582 = arith.divf %580, %581 : vector<8x1xf32>
    %583 = vector.broadcast %575 : vector<8x1xf32> to vector<8x32xf32>
    %584 = arith.subf %571, %583 : vector<8x32xf32>
    %cst_191 = arith.constant 9.99999974E-6 : f32
    %585 = vector.broadcast %cst_191 : f32 to vector<8x1xf32>
    %586 = arith.addf %582, %585 : vector<8x1xf32>
    %587 = math.rsqrt %586 : vector<8x1xf32>
    %588 = vector.broadcast %587 : vector<8x1xf32> to vector<8x32xf32>
    %589 = arith.mulf %584, %588 : vector<8x32xf32>
    %c0_192 = arith.constant 0 : index
    %c0_193 = arith.constant 0 : index
    %590 = vector.load %arg10[%c0_192, %c0_193] : memref<1x32xf32, #tpu.memory_space<vmem>>, vector<1x32xf32>
    %591 = vector.broadcast %590 : vector<1x32xf32> to vector<8x32xf32>
    %592 = arith.mulf %589, %591 : vector<8x32xf32>
    %c0_194 = arith.constant 0 : index
    %c0_195 = arith.constant 0 : index
    %593 = vector.load %arg11[%c0_194, %c0_195] : memref<1x32xf32, #tpu.memory_space<vmem>>, vector<1x32xf32>
    %594 = vector.broadcast %593 : vector<1x32xf32> to vector<8x32xf32>
    %595 = arith.addf %592, %594 : vector<8x32xf32>
    %596 = arith.truncf %595 : vector<8x32xf32> to vector<8x32xbf16>
    %c0_196 = arith.constant 0 : index
    %c0_197 = arith.constant 0 : index
    %597 = vector.load %arg12[%c0_196, %c0_197] : memref<32x128xbf16, #tpu.memory_space<vmem>>, vector<32x128xbf16>
    %cst_198 = arith.constant dense<0.000000e+00> : vector<8x128xf32>
    %598 = tpu.matmul %596, %597, %cst_198 {dimension_numbers = #tpu.dot_dimension_numbers<[1], [0], [0], [1], [0, 0, 1, 1], [], []>} : vector<8x32xbf16>, vector<32x128xbf16>, vector<8x128xf32> -> vector<8x128xf32>
    %c0_199 = arith.constant 0 : index
    %c0_200 = arith.constant 0 : index
    %599 = vector.load %arg13[%c0_199, %c0_200] : memref<1x128xf32, #tpu.memory_space<vmem>>, vector<1x128xf32>
    %600 = vector.broadcast %599 : vector<1x128xf32> to vector<8x128xf32>
    %601 = arith.addf %598, %600 : vector<8x128xf32>
    %c0_201 = arith.constant 0 : index
    %c0_202 = arith.constant 0 : index
    %602 = vector.load %arg14[%c0_201, %c0_202] : memref<8x128xf32, #tpu.memory_space<vmem>>, vector<8x128xf32>
    tpu.vector_store %arg14[%c0_201, %c0_202], %601 {strides = array<i32>} : memref<8x128xf32, #tpu.memory_space<vmem>>, vector<8x128xf32>,
    return
  }
}

</mosaic_0001>

<bundles_post_ra>
// kernel: lstm_model_forward.1
= control target key start
LH: loop header
LB: loop body
LE: loop exit
PB: predicated region body
PF: predicated region fallthrough
CT: control target
= control target key end

     0   :  { %v3530_v0 = vmov 0.0   ;;  %vm3531_vm0 = vmmov 0   ;;  %vm91_vm1 = vcmask 130048   ;;  %v3532_v6 = vmov 0   ;;  %s3533_s24 = smov 64   ;;  %s3534_s25 = smov 32   ;;  %s4285_s1 = inlined_call_operand.vmem [shape: bf16[16,128], index: 1, kind: input, shape index: {}]   ;;  %s4286_s2 = inlined_call_operand.vmem [shape: bf16[32,128], index: 2, kind: input, shape index: {}]   ;;  %s4287_s0 = inlined_call_operand.vmem [shape: bf16[64,16], index: 0, kind: input, shape index: {}]   ;;  %s4288_s3 = inlined_call_operand.vmem [shape: f32[1,128], index: 3, kind: input, shape index: {}]   ;;  %s4289_s5 = inlined_call_operand.vmem [shape: bf16[32,128], index: 5, kind: input, shape index: {}]   ;;  %s4290_s4 = inlined_call_operand.vmem [shape: bf16[32,128], index: 4, kind: input, shape index: {}]   ;;  %s4291_s6 = inlined_call_operand.vmem [shape: f32[1,128], index: 6, kind: input, shape index: {}]   ;;  %s4292_s7 = inlined_call_operand.vmem [shape: bf16[32,128], index: 7, kind: input, shape index: {}]   ;;  %s4293_s8 = inlined_call_operand.vmem [shape: bf16[32,128], index: 8, kind: input, shape index: {}]   ;;  %s4294_s9 = inlined_call_operand.vmem [shape: f32[1,128], index: 9, kind: input, shape index: {}]   ;;  %s4295_s10 = inlined_call_operand.vmem [shape: f32[1,32], index: 10, kind: input, shape index: {}]   ;;  %s4296_s11 = inlined_call_operand.vmem [shape: f32[1,32], index: 11, kind: input, shape index: {}]   ;;  %s4297_s12 = inlined_call_operand.vmem [shape: bf16[32,128], index: 12, kind: input, shape index: {}]   ;;  %s4298_s13 = inlined_call_operand.vmem [shape: f32[1,128], index: 13, kind: input, shape index: {}]   ;;  %s4299_s14 = inlined_call_operand.vmem [shape: f32[8,128], index: 14, kind: output, shape index: {}]  }
   0x1   :  { %2972 = vmatprep.subr.bf16.mxu1 %v3530_v0  ;;  %v3306_v1 = vld [vmem:[%s4285_s1] sm:$0xff]   ;;  %2976 = vmatprep.mubr.msk.bf16.mxu1 %vm3531_vm0, %v3530_v0  ;;  %v3620_v2 = vld [vmem:[%s4286_s2 + $0x8] sm:$0xff]   ;;  %v3312_v26 = vld [vmem:[%s4287_s0 + $0x10] sm:$0xff]   ;;  %vm185_vm2 = vcmask 261120   ;;  %s3535_s20 = smov 96  }
   0x2   :  { %2962 = vmatprep.subr.bf16.mxu0 %v3306_v1  ;;  %v3308_v3 = vld [vmem:[%s4287_s0] sm:$0xff]   ;;  %2973 = vmatpush3.bf16.msra.mxu1 %v3620_v2  ;;  %v3309_v4 = vld [vmem:[%s4287_s0 + $0x8] sm:$0xff]   ;;  %v3313_v27 = vld [vmem:[%s4287_s0 + $0x18] sm:$0xff]  }
   0x3   :  { %2963 = vmatpush3.bf16.msra.mxu0 %v3306_v1  ;;  %2964 = vmatprep.mubr.msk.bf16.mxu0 %vm91_vm1, %v3308_v3  ;;  %v3634_v5 = vld [vmem:[%s4286_s2] sm:$0xff]   ;;  %v3669_v28 = vld [vmem:[%s4289_s5 + $0x8] sm:$0xff]  }
   0x4   :  { %2974 = vmatprep.subr.bf16.mxu1 %v3530_v0  ;;  %2988 = vmatprep.subr.bf16.mxu0 %v3530_v0  ;;  %v3652_v8 = vld [vmem:[%s4288_s3] ss:$0 sm:$0xff]  ;;  %v3696_v34 = vld [vmem:[%s4290_s4 + $0x8] sm:$0xff]  }
   0x5   :  { %v3676_v29 = vld [vmem:[%s4289_s5] sm:$0xff]  }
   0x6   :  { %2965 = vmatmul.mubr.msk.bf16.vlgmr.msra.gmra.mxu0 %vm91_vm1, %v3309_v4  ;;  %2975 = vmatpush3.bf16.msra.mxu1 %v3634_v5  ;;  %v3703_v36 = vld [vmem:[%s4290_s4] sm:$0xff]  }
   0x7   :  { %2980 = vmatprep.subr.bf16.mxu1 %v3530_v0  ;;  %2968 = vmatprep.mubr.msk.bf16.mxu0 %vm91_vm1, %v3312_v26  ;;  %v3731_v54 = vld [vmem:[%s4291_s6] ss:$0 sm:$0xff] }
   0x8   :  { %2989 = vmatpush3.bf16.msra.mxu0 %v3669_v28 }
   0x9   :  { %2977 = vmatmul.mubr.bf16.vlgmr.msra.gmra.mxu1 %v3532_v6  ;;  %2990 = vmatprep.subr.bf16.mxu0 %v3530_v0 }
   0xa   :  { %2981 = vmatpush3.bf16.msra.mxu1 %v3620_v2  ;;  %2984 = vmatprep.mubr.msk.bf16.mxu1 %vm3531_vm0, %v3530_v0 }
   0xb   :  { %2982 = vmatprep.subr.bf16.mxu1 %v3530_v0 }
   0xc   :  { %2991 = vmatpush3.bf16.msra.mxu0 %v3676_v29 }
   0xd   :  { %3004 = vmatprep.subr.bf16.mxu0 %v3530_v0 }
   0xe   :  { %2983 = vmatpush3.bf16.msra.mxu1 %v3634_v5  ;;  %2969 = vmatmul.mubr.msk.bf16.gmra.mxu0 %vm91_vm1, %v3313_v27 }
   0xf   :  { %2996 = vmatprep.subr.bf16.mxu1 %v3530_v0  ;;  %2992 = vmatprep.mubr.msk.bf16.mxu0 %vm3531_vm0, %v3530_v0 }
  0x16   :  { %2993 = vmatmul.mubr.bf16.vlgmr.msra.gmra.mxu0 %v3532_v6 }
  0x17   :  { %3005 = vmatpush3.bf16.msra.mxu0 %v3620_v2  ;;  %3008 = vmatprep.mubr.msk.bf16.mxu0 %vm3531_vm0, %v3530_v0 }
  0x18   :  { %3006 = vmatprep.subr.bf16.mxu0 %v3530_v0 }
  0x1b   :  { %3007 = vmatpush3.bf16.msra.mxu0 %v3634_v5 }
  0x1c   :  { %3020 = vmatprep.subr.bf16.mxu0 %v3530_v0 }
  0xc6   :  { %v3647_v7 = vpop.f32.mrf.mxu0 }
  0xc8   :  { %v138_v9 = vpop.f32.mrf.mxu0 }
  0xc9   :  { %v139_v10 = vadd.f32 %v3652_v8, %v138_v9  ;;  %v223_v11 = vpop.f32.mrf.mxu1 }
  0xca   :  { %v3717_v37 = vpop.f32.mrf.mxu0 }
  0xcb   :  { %v229_v12 = vadd.f32 %v223_v11, %v139_v10  ;;  %v2978_v13 = vpop.f32.mrf.mxu1 }
  0xcc   :  { %v141_v38 = vpop.f32.mrf.mxu0 }
  0xcd   :  { %3323 = vtanh.f32 %v229_v12  ;;  %v226_v14 = vpop.f32.mrf.mxu1  ;;  %v2757_v17 = vmul.f32 -1.442695, %v229_v12  ;;  %v142_v47 = vadd.f32 %v3652_v8, %v141_v38 }
  0xce   :  { %v3719_v39 = vpop.f32.mrf.mxu0 }
  0xcf   :  { %v2979_v15 = vpop.f32.mrf.mxu1  ;;  %3325 = vpow2.f32 %v2757_v17 }
  0xd0   :  { %v3721_v40 = vpop.f32.mrf.mxu0 }
  0xd2   :  { %v3723_v41 = vpop.f32.mrf.mxu0 }
  0xd4   :  { %v3725_v42 = vpop.f32.mrf.mxu0 }
  0xd6   :  { %v376_v43 = vpop.f32.mrf.mxu0 }
  0xd8   :  { %v2994_v44 = vpop.f32.mrf.mxu0 }
  0xd9   :  { %v3781_v44 = vld [vmem:[%s4293_s8] sm:$0xff]  }
  0xda   :  { %v3324_v16 = vpop.eup %3323  ;;  %v379_v45 = vpop.f32.mrf.mxu0 }
  0xdb   :  { %239 = vrot.lane.b32.xlu0 %v3324_v16, %s3533_s24 }
  0xdc   :  { %v3326_v18 = vpop.eup %3325  ;;  %v2995_v46 = vpop.f32.mrf.mxu0 }
  0xdd   :  { %v233_v19 = vadd.f32 1.0, %v3326_v18 }
  0xdf   :  { %3327 = vrcp.f32 %v233_v19 }
  0xec   :  { %v3328_v20 = vpop.eup %3327 }
  0xed   :  { %v237_v23 = vmul.f32 0.0, %v3328_v20 }
 0x14d   :  { %v240_v21 = vpop.permute.xlu0 %239 }
 0x14e   :  { %v242_v22 = vmul.f32 %v3328_v20, %v240_v21 }
 0x150   :  { %244 = vrot.lane.b32.xlu0 %v242_v22, %s3534_s25 }
 0x1c2   :  { %v245_v24 = vpop.permute.xlu0 %244 }
 0x1c3   :  { %v3657_v25 = vadd.f32 %v245_v24, %v237_v23 }
 0x1c5   :  { %3329 = vtanh.f32 %v3657_v25 }
 0x1d2   :  { %v3330_v30 = vpop.eup %3329 }
 0x1d3   :  { %250 = vrot.lane.b32.xlu1 %v3330_v30, %s3533_s24 }
 0x245   :  { %v251_v31 = vpop.permute.xlu1 %250 }
 0x246   :  { %v253_v32 = vmul.f32 %v3328_v20, %v251_v31 }
 0x248   :  { %v254_v33 = vpack.c.bf16 %v253_v32, %v253_v32 }
 0x24a   :  { %256 = vrot.lane.b32.xlu1 %v254_v33, %s3534_s25  ;;  %v3758_v33 = vld [vmem:[%s4292_s7 + $0x8] sm:$0xff]  }
 0x2bc   :  { %v257_v35 = vpop.permute.xlu1 %256 }
 0x2bd   :  { %2985 = vmatmul.mubr.msk.bf16.vlgmr.msra.gmra.mxu1 %vm185_vm2, %v257_v35 }
 0x2be   :  { %2997 = vmatpush3.bf16.msra.mxu1 %v3696_v34  ;;  %3000 = vmatprep.mubr.msk.bf16.mxu1 %vm3531_vm0, %v3530_v0 }
 0x2bf   :  { %2998 = vmatprep.subr.bf16.mxu1 %v3530_v0 }
 0x2c2   :  { %2999 = vmatpush3.bf16.msra.mxu1 %v3703_v36 }
 0x2c3   :  { %3012 = vmatprep.subr.bf16.mxu1 %v3530_v0 }
 0x2c5   :  { %3001 = vmatmul.mubr.msk.bf16.vlgmr.msra.gmra.mxu1 %vm185_vm2, %v257_v35  ;;  %v3764_v35 = vld [vmem:[%s4293_s8 + $0x8] sm:$0xff]  }
 0x2c6   :  { %3013 = vmatpush3.bf16.msra.mxu1 %v3669_v28  ;;  %3016 = vmatprep.mubr.msk.bf16.mxu1 %vm3531_vm0, %v3530_v0 }
 0x2c7   :  { %3014 = vmatprep.subr.bf16.mxu1 %v3530_v0 }
 0x2ca   :  { %3015 = vmatpush3.bf16.msra.mxu1 %v3676_v29 }
 0x2cb   :  { %3028 = vmatprep.subr.bf16.mxu1 %v3530_v0 }
 0x37d   :  { %v295_v48 = vpop.f32.mrf.mxu1 }
 0x37e   :  { %v301_v49 = vadd.f32 %v295_v48, %v142_v47 }
 0x37f   :  { %v2986_v50 = vpop.f32.mrf.mxu1 }
 0x380   :  { %3331 = vtanh.f32 %v301_v49  ;;  %v2759_v62 = vmul.f32 -1.442695, %v301_v49 }
 0x381   :  { %v298_v51 = vpop.f32.mrf.mxu1 }
 0x383   :  { %v2987_v52 = vpop.f32.mrf.mxu1 }
 0x385   :  { %v432_v53 = vpop.f32.mrf.mxu1 }
 0x386   :  { %v433_v55 = vadd.f32 %v432_v53, %v376_v43  ;;  %v3771_v43 = vld [vmem:[%s4292_s7] sm:$0xff]  }
 0x387   :  { %v3002_v56 = vpop.f32.mrf.mxu1 }
 0x388   :  { %v445_v57 = vadd.f32 %v3731_v54, %v433_v55 }
 0x389   :  { %v435_v58 = vpop.f32.mrf.mxu1 }
 0x38a   :  { %3333 = vtanh.f32 %v445_v57  ;;  %v2766_v63 = vmul.f32 -1.442695, %v445_v57 }
 0x38b   :  { %v3003_v59 = vpop.f32.mrf.mxu1  ;;  %3335 = vpow2.f32 %v2759_v62 }
 0x38c   :  { %3337 = vpow2.f32 %v2766_v63  ;;  %v3811_v63 = vld [vmem:[%s4294_s9] ss:$0 sm:$0xff] }
 0x38d   :  { %v3332_v60 = vpop.eup %3331 }
 0x38e   :  { %311 = vrot.lane.b32.xlu0 %v3332_v60, %s3533_s24 }
 0x397   :  { %v3334_v61 = vpop.eup %3333 }
 0x398   :  { %455 = vrot.lane.b32.xlu1 %v3334_v61, %s3533_s24  ;;  %v3336_v1 = vpop.eup %3335 }
 0x399   :  { %v305_v3 = vadd.f32 1.0, %v3336_v1  ;;  %v3338_v4 = vpop.eup %3337 }
 0x39a   :  { %v449_v9 = vadd.f32 1.0, %v3338_v4 }
 0x39b   :  { %3339 = vrcp.f32 %v305_v3 }
 0x39c   :  { %3341 = vrcp.f32 %v449_v9 }
 0x3a8   :  { %v3340_v10 = vpop.eup %3339 }
 0x3a9   :  { %v3342_v13 = vpop.eup %3341  ;;  %v309_v16 = vmul.f32 %v3340_v10, %v3657_v25 }
 0x3aa   :  { %v453_v19 = vmul.f32 0.0, %v3342_v13 }
 0x400   :  { %v312_v11 = vpop.permute.xlu0 %311 }
 0x401   :  { %v314_v12 = vmul.f32 %v3340_v10, %v312_v11 }
 0x403   :  { %316 = vrot.lane.b32.xlu0 %v314_v12, %s3534_s25 }
 0x40a   :  { %v456_v14 = vpop.permute.xlu1 %455 }
 0x40b   :  { %v458_v15 = vmul.f32 %v3342_v13, %v456_v14 }
 0x40d   :  { %460 = vrot.lane.b32.xlu1 %v458_v15, %s3534_s25 }
 0x475   :  { %v317_v17 = vpop.permute.xlu0 %316 }
 0x476   :  { %v3739_v18 = vadd.f32 %v317_v17, %v309_v16 }
 0x478   :  { %3343 = vtanh.f32 %v3739_v18 }
 0x47f   :  { %v461_v20 = vpop.permute.xlu1 %460 }
 0x480   :  { %v3742_v21 = vadd.f32 %v461_v20, %v453_v19 }
 0x482   :  { %3345 = vtanh.f32 %v3742_v21 }
 0x485   :  { %v3344_v22 = vpop.eup %3343 }
 0x486   :  { %322 = vrot.lane.b32.xlu0 %v3344_v22, %s3533_s24 }
 0x48f   :  { %v3346_v23 = vpop.eup %3345 }
 0x490   :  { %466 = vrot.lane.b32.xlu1 %v3346_v23, %s3533_s24 }
 0x4f8   :  { %v323_v24 = vpop.permute.xlu0 %322 }
 0x4f9   :  { %v325_v26 = vmul.f32 %v3340_v10, %v323_v24 }
 0x4fb   :  { %v470_v25 = vpack.c.bf16 %v325_v26, %v325_v26 }
 0x4fd   :  { %472 = vrot.lane.b32.xlu0 %v470_v25, %s3534_s25 }
 0x502   :  { %v467_v27 = vpop.permute.xlu1 %466 }
 0x503   :  { %v469_v30 = vmul.f32 %v3342_v13, %v467_v27 }
 0x505   :  { %v542_v31 = vpack.c.bf16 %v469_v30, %v469_v30 }
 0x507   :  { %544 = vrot.lane.b32.xlu1 %v542_v31, %s3534_s25 }
 0x56f   :  { %v473_v32 = vpop.permute.xlu0 %472 }
 0x570   :  { %3009 = vmatmul.mubr.msk.bf16.vlgmr.msra.gmra.mxu0 %vm185_vm2, %v473_v32 }
 0x571   :  { %3021 = vmatpush3.bf16.msra.mxu0 %v3696_v34  ;;  %3024 = vmatprep.mubr.msk.bf16.mxu0 %vm3531_vm0, %v3530_v0 }
 0x572   :  { %3022 = vmatprep.subr.bf16.mxu0 %v3530_v0 }
 0x575   :  { %3023 = vmatpush3.bf16.msra.mxu0 %v3703_v36 }
 0x576   :  { %3036 = vmatprep.subr.bf16.mxu0 %v3530_v0 }
 0x578   :  { %3025 = vmatmul.mubr.msk.bf16.vlgmr.msra.gmra.mxu0 %vm185_vm2, %v473_v32 }
 0x579   :  { %3037 = vmatpush3.bf16.msra.mxu0 %v3758_v33  ;;  %v545_v38 = vpop.permute.xlu1 %544  ;;  %3040 = vmatprep.mubr.msk.bf16.mxu0 %vm3531_vm0, %v3530_v0 }
 0x57a   :  { %3017 = vmatmul.mubr.msk.bf16.vlgmr.msra.gmra.mxu1 %vm185_vm2, %v545_v38  ;;  %3038 = vmatprep.subr.bf16.mxu0 %v3530_v0 }
 0x57b   :  { %3029 = vmatpush3.bf16.msra.mxu1 %v3764_v35  ;;  %3032 = vmatprep.mubr.msk.bf16.mxu1 %vm3531_vm0, %v3530_v0 }
 0x57c   :  { %3030 = vmatprep.subr.bf16.mxu1 %v3530_v0 }
 0x57d   :  { %3039 = vmatpush3.bf16.msra.mxu0 %v3771_v43 }
 0x57e   :  { %3052 = vmatprep.subr.bf16.mxu0 %v3530_v0 }
 0x57f   :  { %3031 = vmatpush3.bf16.msra.mxu1 %v3781_v44 }
 0x580   :  { %3041 = vmatmul.mubr.msk.bf16.vlgmr.msra.gmra.mxu0 %vm185_vm2, %v545_v38  ;;  %3044 = vmatprep.subr.bf16.mxu1 %v3530_v0 }
 0x581   :  { %3053 = vmatpush3.bf16.msra.mxu0 %v3669_v28  ;;  %3056 = vmatprep.mubr.msk.bf16.mxu0 %vm3531_vm0, %v3530_v0 }
 0x582   :  { %3033 = vmatmul.mubr.bf16.vlgmr.msra.gmra.mxu1 %v3532_v6  ;;  %3054 = vmatprep.subr.bf16.mxu0 %v3530_v0  ;;  %v147_v6 = vadd.f32 %v3647_v7, %v3652_v8 }
 0x583   :  { %3045 = vmatpush3.bf16.msra.mxu1 %v3620_v2  ;;  %3048 = vmatprep.mubr.msk.bf16.mxu1 %vm3531_vm0, %v3530_v0 }
 0x584   :  { %3046 = vmatprep.subr.bf16.mxu1 %v3530_v0 }
 0x585   :  { %3055 = vmatpush3.bf16.msra.mxu0 %v3676_v29 }
 0x586   :  { %3068 = vmatprep.subr.bf16.mxu0 %v3530_v0 }
 0x587   :  { %3047 = vmatpush3.bf16.msra.mxu1 %v3634_v5 }
 0x588   :  { %3060 = vmatprep.subr.bf16.mxu1 %v3530_v0 }
 0x630   :  { %v511_v45 = vpop.f32.mrf.mxu0 }
 0x631   :  { %v517_v46 = vadd.f32 %v511_v45, %v147_v6 }
 0x632   :  { %v3010_v47 = vpop.f32.mrf.mxu0 }
 0x633   :  { %3347 = vtanh.f32 %v517_v46  ;;  %v2768_v16 = vmul.f32 -1.442695, %v517_v46 }
 0x634   :  { %v514_v48 = vpop.f32.mrf.mxu0 }
 0x636   :  { %v3011_v49 = vpop.f32.mrf.mxu0 }
 0x638   :  { %v623_v50 = vpop.f32.mrf.mxu0 }
 0x63a   :  { %v583_v51 = vpop.f32.mrf.mxu1  ;;  %v3026_v52 = vpop.f32.mrf.mxu0 }
 0x63b   :  { %v624_v53 = vadd.f32 %v623_v50, %v583_v51 }
 0x63c   :  { %v3018_v55 = vpop.f32.mrf.mxu1  ;;  %v626_v56 = vpop.f32.mrf.mxu0 }
 0x63d   :  { %v629_v57 = vadd.f32 %v3731_v54, %v624_v53 }
 0x63e   :  { %v586_v58 = vpop.f32.mrf.mxu1  ;;  %v3027_v59 = vpop.f32.mrf.mxu0 }
 0x63f   :  { %3349 = vtanh.f32 %v629_v57  ;;  %v2771_v17 = vmul.f32 -1.442695, %v629_v57 }
 0x640   :  { %v3348_v60 = vpop.eup %3347  ;;  %v3019_v61 = vpop.f32.mrf.mxu1 }
 0x641   :  { %v760_v7 = vpop.f32.mrf.mxu0  ;;  %527 = vrot.lane.b32.xlu0 %v3348_v60, %s3533_s24 }
 0x642   :  { %v704_v62 = vpop.f32.mrf.mxu1 }
 0x643   :  { %v3042_v1 = vpop.f32.mrf.mxu0  ;;  %v761_v3 = vadd.f32 %v760_v7, %v704_v62 }
 0x644   :  { %v3034_v4 = vpop.f32.mrf.mxu1 }
 0x645   :  { %v763_v9 = vpop.f32.mrf.mxu0  ;;  %v773_v10 = vadd.f32 %v3811_v63, %v761_v3 }
 0x646   :  { %v707_v11 = vpop.f32.mrf.mxu1 }
 0x647   :  { %v3043_v12 = vpop.f32.mrf.mxu0  ;;  %3351 = vtanh.f32 %v773_v10  ;;  %v2778_v22 = vmul.f32 -1.442695, %v773_v10 }
 0x648   :  { %v3035_v13 = vpop.f32.mrf.mxu1  ;;  %3353 = vpow2.f32 %v2768_v16 }
 0x649   :  { %3355 = vpow2.f32 %v2771_v17  ;;  %v150_v13 = vadd.f32 %v3717_v37, %v3652_v8 }
 0x64c   :  { %v3350_v14 = vpop.eup %3349 }
 0x64d   :  { %639 = vrot.lane.b32.xlu1 %v3350_v14, %s3533_s24 }
 0x654   :  { %v3352_v15 = vpop.eup %3351 }
 0x655   :  { %783 = vrot.lane.b32.xlu0 %v3352_v15, %s3533_s24  ;;  %v3354_v19 = vpop.eup %3353 }
 0x656   :  { %v521_v20 = vadd.f32 1.0, %v3354_v19  ;;  %v3356_v23 = vpop.eup %3355 }
 0x657   :  { %v633_v24 = vadd.f32 1.0, %v3356_v23 }
 0x658   :  { %3357 = vrcp.f32 %v521_v20 }
 0x659   :  { %3359 = vpow2.f32 %v2778_v22 }
 0x65a   :  { %3361 = vrcp.f32 %v633_v24 }
 0x665   :  { %v3358_v26 = vpop.eup %3357 }
 0x666   :  { %v3360_v25 = vpop.eup %3359  ;;  %v525_v48 = vmul.f32 %v3358_v26, %v3739_v18 }
 0x667   :  { %v777_v31 = vadd.f32 1.0, %v3360_v25  ;;  %v3362_v32 = vpop.eup %3361 }
 0x668   :  { %v637_v51 = vmul.f32 %v3362_v32, %v3742_v21 }
 0x669   :  { %3363 = vrcp.f32 %v777_v31 }
 0x676   :  { %v3364_v45 = vpop.eup %3363 }
 0x677   :  { %v781_v56 = vmul.f32 0.0, %v3364_v45 }
 0x6b3   :  { %v528_v27 = vpop.permute.xlu0 %527 }
 0x6b4   :  { %v530_v30 = vmul.f32 %v3358_v26, %v528_v27 }
 0x6b6   :  { %532 = vrot.lane.b32.xlu1 %v530_v30, %s3534_s25 }
 0x6bf   :  { %v640_v38 = vpop.permute.xlu1 %639 }
 0x6c0   :  { %v642_v6 = vmul.f32 %v3362_v32, %v640_v38 }
 0x6c2   :  { %644 = vrot.lane.b32.xlu0 %v642_v6, %s3534_s25 }
 0x6c7   :  { %v784_v46 = vpop.permute.xlu0 %783 }
 0x6c8   :  { %v786_v47 = vmul.f32 %v3364_v45, %v784_v46 }
 0x6ca   :  { %788 = vrot.lane.b32.xlu1 %v786_v47, %s3534_s25 }
 0x728   :  { %v533_v49 = vpop.permute.xlu1 %532 }
 0x729   :  { %v3820_v50 = vadd.f32 %v533_v49, %v525_v48 }
 0x72b   :  { %3365 = vtanh.f32 %v3820_v50 }
 0x734   :  { %v645_v52 = vpop.permute.xlu0 %644 }
 0x735   :  { %v3824_v53 = vadd.f32 %v645_v52, %v637_v51 }
 0x737   :  { %3367 = vtanh.f32 %v3824_v53 }
 0x738   :  { %v3366_v55 = vpop.eup %3365 }
 0x739   :  { %538 = vrot.lane.b32.xlu0 %v3366_v55, %s3533_s24 }
 0x73c   :  { %v789_v57 = vpop.permute.xlu1 %788 }
 0x73d   :  { %v3828_v58 = vadd.f32 %v789_v57, %v781_v56 }
 0x73f   :  { %3369 = vtanh.f32 %v3828_v58 }
 0x744   :  { %v3368_v18 = vpop.eup %3367 }
 0x745   :  { %650 = vrot.lane.b32.xlu1 %v3368_v18, %s3533_s24 }
 0x74c   :  { %v3370_v59 = vpop.eup %3369 }
 0x74d   :  { %794 = vrot.lane.b32.xlu0 %v3370_v59, %s3533_s24 }
 0x7ab   :  { %v539_v21 = vpop.permute.xlu0 %538 }
 0x7ac   :  { %v541_v60 = vmul.f32 %v3358_v26, %v539_v21 }
 0x7ae   :  { %v798_v61 = vpack.c.bf16 %v541_v60, %v541_v60 }
 0x7b0   :  { %800 = vrot.lane.b32.xlu1 %v798_v61, %s3534_s25 }
 0x7b7   :  { %v651_v7 = vpop.permute.xlu1 %650 }
 0x7b8   :  { %v653_v62 = vmul.f32 %v3362_v32, %v651_v7 }
 0x7ba   :  { %v870_v1 = vpack.c.bf16 %v653_v62, %v653_v62 }
 0x7bc   :  { %872 = vrot.lane.b32.xlu0 %v870_v1, %s3534_s25 }
 0x7bf   :  { %v795_v3 = vpop.permute.xlu0 %794 }
 0x7c0   :  { %v797_v4 = vmul.f32 %v3364_v45, %v795_v3 }
 0x7c2   :  { %v982_v9 = vpack.c.bf16 %v797_v4, %v797_v4 }
 0x7c4   :  { %984 = vrot.lane.b32.xlu1 %v982_v9, %s3534_s25 }
 0x822   :  { %v801_v10 = vpop.permute.xlu1 %800 }
 0x823   :  { %3049 = vmatmul.mubr.msk.bf16.vlgmr.msra.gmra.mxu1 %vm185_vm2, %v801_v10 }
 0x824   :  { %3061 = vmatpush3.bf16.msra.mxu1 %v3696_v34  ;;  %3064 = vmatprep.mubr.msk.bf16.mxu1 %vm3531_vm0, %v3530_v0 }
 0x825   :  { %3062 = vmatprep.subr.bf16.mxu1 %v3530_v0 }
 0x828   :  { %3063 = vmatpush3.bf16.msra.mxu1 %v3703_v36 }
 0x829   :  { %3076 = vmatprep.subr.bf16.mxu1 %v3530_v0 }
 0x82b   :  { %3065 = vmatmul.mubr.msk.bf16.vlgmr.msra.gmra.mxu1 %vm185_vm2, %v801_v10 }
 0x82c   :  { %3077 = vmatpush3.bf16.msra.mxu1 %v3758_v33  ;;  %3080 = vmatprep.mubr.msk.bf16.mxu1 %vm3531_vm0, %v3530_v0 }
 0x82d   :  { %3078 = vmatprep.subr.bf16.mxu1 %v3530_v0 }
 0x82e   :  { %v873_v11 = vpop.permute.xlu0 %872 }
 0x82f   :  { %3057 = vmatmul.mubr.msk.bf16.vlgmr.msra.gmra.mxu0 %vm185_vm2, %v873_v11 }
 0x830   :  { %3069 = vmatpush3.bf16.msra.mxu0 %v3764_v35  ;;  %3079 = vmatpush3.bf16.msra.mxu1 %v3771_v43 }
 0x831   :  { %3070 = vmatprep.subr.bf16.mxu0 %v3530_v0  ;;  %3072 = vmatprep.mubr.msk.bf16.mxu0 %vm3531_vm0, %v3530_v0 }
 0x832   :  { %3092 = vmatprep.subr.bf16.mxu1 %v3530_v0 }
 0x833   :  { %3081 = vmatmul.mubr.msk.bf16.vlgmr.msra.gmra.mxu1 %vm185_vm2, %v873_v11 }
 0x834   :  { %3071 = vmatpush3.bf16.msra.mxu0 %v3781_v44  ;;  %3093 = vmatpush3.bf16.msra.mxu1 %v3669_v28 }
 0x835   :  { %3084 = vmatprep.subr.bf16.mxu0 %v3530_v0  ;;  %3094 = vmatprep.subr.bf16.mxu1 %v3530_v0 }
 0x836   :  { %v985_v12 = vpop.permute.xlu1 %984  ;;  %3096 = vmatprep.mubr.msk.bf16.mxu1 %vm3531_vm0, %v3530_v0 }
 0x837   :  { %3073 = vmatmul.mubr.msk.bf16.vlgmr.msra.gmra.mxu0 %vm185_vm2, %v985_v12 }
 0x838   :  { %3085 = vmatpush3.bf16.msra.mxu0 %v3620_v2  ;;  %3088 = vmatprep.mubr.msk.bf16.mxu0 %vm3531_vm0, %v3530_v0 }
 0x839   :  { %3086 = vmatprep.subr.bf16.mxu0 %v3530_v0  ;;  %3095 = vmatpush3.bf16.msra.mxu1 %v3676_v29 }
 0x83a   :  { %3108 = vmatprep.subr.bf16.mxu1 %v3530_v0 }
 0x83c   :  { %3087 = vmatpush3.bf16.msra.mxu0 %v3634_v5 }
 0x83d   :  { %3100 = vmatprep.subr.bf16.mxu0 %v3530_v0 }
 0x8e3   :  { %v839_v14 = vpop.f32.mrf.mxu1 }
 0x8e4   :  { %v845_v15 = vadd.f32 %v839_v14, %v150_v13 }
 0x8e5   :  { %v3050_v16 = vpop.f32.mrf.mxu1 }
 0x8e6   :  { %3371 = vtanh.f32 %v845_v15  ;;  %v2780_v18 = vmul.f32 -1.442695, %v845_v15 }
 0x8e7   :  { %v842_v17 = vpop.f32.mrf.mxu1 }
 0x8e9   :  { %v3051_v19 = vpop.f32.mrf.mxu1 }
 0x8eb   :  { %v951_v20 = vpop.f32.mrf.mxu1 }
 0x8ed   :  { %v3066_v22 = vpop.f32.mrf.mxu1 }
 0x8ef   :  { %v911_v23 = vpop.f32.mrf.mxu0  ;;  %v954_v24 = vpop.f32.mrf.mxu1 }
 0x8f0   :  { %v952_v26 = vadd.f32 %v951_v20, %v911_v23 }
 0x8f1   :  { %v3058_v25 = vpop.f32.mrf.mxu0  ;;  %v3067_v27 = vpop.f32.mrf.mxu1 }
 0x8f2   :  { %v957_v30 = vadd.f32 %v3731_v54, %v952_v26 }
 0x8f3   :  { %v3372_v31 = vpop.eup %3371  ;;  %v914_v32 = vpop.f32.mrf.mxu0 }
 0x8f4   :  { %v1063_v38 = vpop.f32.mrf.mxu1  ;;  %3373 = vtanh.f32 %v957_v30  ;;  %855 = vrot.lane.b32.xlu0 %v3372_v31, %s3533_s24  ;;  %v2783_v59 = vmul.f32 -1.442695, %v957_v30 }
 0x8f5   :  { %v3059_v37 = vpop.f32.mrf.mxu0 }
 0x8f6   :  { %v3082_v6 = vpop.f32.mrf.mxu1 }
 0x8f7   :  { %v1023_v45 = vpop.f32.mrf.mxu0 }
 0x8f8   :  { %v1066_v46 = vpop.f32.mrf.mxu1  ;;  %v1064_v47 = vadd.f32 %v1063_v38, %v1023_v45 }
 0x8f9   :  { %v3074_v48 = vpop.f32.mrf.mxu0 }
 0x8fa   :  { %v3083_v49 = vpop.f32.mrf.mxu1  ;;  %v1069_v51 = vadd.f32 %v3811_v63, %v1064_v47 }
 0x8fb   :  { %v1026_v52 = vpop.f32.mrf.mxu0 }
 0x8fc   :  { %3375 = vtanh.f32 %v1069_v51  ;;  %v2786_v61 = vmul.f32 -1.442695, %v1069_v51 }
 0x8fd   :  { %v3075_v55 = vpop.f32.mrf.mxu0  ;;  %3377 = vpow2.f32 %v2780_v18 }
 0x8fe   :  { %3379 = vpow2.f32 %v2783_v59 }
 0x901   :  { %v3374_v56 = vpop.eup %3373 }
 0x902   :  { %967 = vrot.lane.b32.xlu1 %v3374_v56, %s3533_s24 }
 0x909   :  { %v3376_v57 = vpop.eup %3375 }
 0x90a   :  { %1079 = vrot.lane.b32.xlu0 %v3376_v57, %s3533_s24  ;;  %v3378_v21 = vpop.eup %3377 }
 0x90b   :  { %v849_v60 = vadd.f32 1.0, %v3378_v21  ;;  %v3380_v7 = vpop.eup %3379 }
 0x90c   :  { %v961_v62 = vadd.f32 1.0, %v3380_v7 }
 0x90d   :  { %3381 = vrcp.f32 %v849_v60 }
 0x90e   :  { %3383 = vpow2.f32 %v2786_v61 }
 0x90f   :  { %3385 = vrcp.f32 %v961_v62 }
 0x91a   :  { %v3382_v1 = vpop.eup %3381 }
 0x91b   :  { %v3384_v9 = vpop.eup %3383  ;;  %v853_v17 = vmul.f32 %v3382_v1, %v3820_v50 }
 0x91c   :  { %v1073_v10 = vadd.f32 1.0, %v3384_v9  ;;  %v3386_v11 = vpop.eup %3385 }
 0x91d   :  { %v965_v22 = vmul.f32 %v3386_v11, %v3824_v53 }
 0x91e   :  { %3387 = vrcp.f32 %v1073_v10 }
 0x92b   :  { %v3388_v14 = vpop.eup %3387 }
 0x92c   :  { %v1077_v25 = vmul.f32 %v3388_v14, %v3828_v58 }
 0x966   :  { %v856_v3 = vpop.permute.xlu0 %855 }
 0x967   :  { %v858_v4 = vmul.f32 %v3382_v1, %v856_v3 }
 0x969   :  { %860 = vrot.lane.b32.xlu1 %v858_v4, %s3534_s25 }
 0x974   :  { %v968_v12 = vpop.permute.xlu1 %967 }
 0x975   :  { %v970_v13 = vmul.f32 %v3386_v11, %v968_v12 }
 0x977   :  { %972 = vrot.lane.b32.xlu0 %v970_v13, %s3534_s25 }
 0x97c   :  { %v1080_v15 = vpop.permute.xlu0 %1079 }
 0x97d   :  { %v1082_v16 = vmul.f32 %v3388_v14, %v1080_v15 }
 0x97f   :  { %1084 = vrot.lane.b32.xlu1 %v1082_v16, %s3534_s25 }
 0x9db   :  { %v861_v19 = vpop.permute.xlu1 %860 }
 0x9dc   :  { %v3882_v20 = vadd.f32 %v861_v19, %v853_v17 }
 0x9de   :  { %3389 = vtanh.f32 %v3882_v20 }
 0x9e9   :  { %v973_v23 = vpop.permute.xlu0 %972 }
 0x9ea   :  { %v3886_v24 = vadd.f32 %v973_v23, %v965_v22 }
 0x9eb   :  { %v3390_v26 = vpop.eup %3389 }
 0x9ec   :  { %3391 = vtanh.f32 %v3886_v24  ;;  %866 = vrot.lane.b32.xlu0 %v3390_v26, %s3533_s24 }
 0x9f1   :  { %v1085_v27 = vpop.permute.xlu1 %1084 }
 0x9f2   :  { %v3891_v30 = vadd.f32 %v1085_v27, %v1077_v25 }
 0x9f4   :  { %3393 = vtanh.f32 %v3891_v30 }
 0x9f9   :  { %v3392_v50 = vpop.eup %3391 }
 0x9fa   :  { %978 = vrot.lane.b32.xlu1 %v3392_v50, %s3533_s24 }
 0xa01   :  { %v3394_v31 = vpop.eup %3393 }
 0xa02   :  { %1090 = vrot.lane.b32.xlu0 %v3394_v31, %s3533_s24 }
 0xa5e   :  { %v867_v53 = vpop.permute.xlu0 %866 }
 0xa5f   :  { %v869_v32 = vmul.f32 %v3382_v1, %v867_v53 }
 0xa61   :  { %v1094_v38 = vpack.c.bf16 %v869_v32, %v869_v32 }
 0xa63   :  { %1096 = vrot.lane.b32.xlu1 %v1094_v38, %s3534_s25 }
 0xa6c   :  { %v979_v37 = vpop.permute.xlu1 %978 }
 0xa6d   :  { %v981_v6 = vmul.f32 %v3386_v11, %v979_v37 }
 0xa6f   :  { %v1166_v45 = vpack.c.bf16 %v981_v6, %v981_v6 }
 0xa71   :  { %1168 = vrot.lane.b32.xlu0 %v1166_v45, %s3534_s25 }
 0xa74   :  { %v1091_v58 = vpop.permute.xlu0 %1090 }
 0xa75   :  { %v1093_v46 = vmul.f32 %v3388_v14, %v1091_v58 }
 0xa77   :  { %v1278_v47 = vpack.c.bf16 %v1093_v46, %v1093_v46 }
 0xa79   :  { %1280 = vrot.lane.b32.xlu1 %v1278_v47, %s3534_s25 }
 0xad5   :  { %v1097_v48 = vpop.permute.xlu1 %1096 }
 0xad6   :  { %3089 = vmatmul.mubr.msk.bf16.vlgmr.msra.gmra.mxu0 %vm185_vm2, %v1097_v48 }
 0xad7   :  { %3101 = vmatpush3.bf16.msra.mxu0 %v3696_v34  ;;  %3104 = vmatprep.mubr.msk.bf16.mxu0 %vm3531_vm0, %v3530_v0 }
 0xad8   :  { %3102 = vmatprep.subr.bf16.mxu0 %v3530_v0 }
 0xadb   :  { %3103 = vmatpush3.bf16.msra.mxu0 %v3703_v36 }
 0xadc   :  { %3116 = vmatprep.subr.bf16.mxu0 %v3530_v0 }
 0xade   :  { %3105 = vmatmul.mubr.msk.bf16.vlgmr.msra.gmra.mxu0 %vm185_vm2, %v1097_v48 }
 0xadf   :  { %3117 = vmatpush3.bf16.msra.mxu0 %v3758_v33  ;;  %3120 = vmatprep.mubr.msk.bf16.mxu0 %vm3531_vm0, %v3530_v0 }
 0xae0   :  { %3118 = vmatprep.subr.bf16.mxu0 %v3530_v0 }
 0xae3   :  { %3119 = vmatpush3.bf16.msra.mxu0 %v3771_v43  ;;  %v1169_v49 = vpop.permute.xlu0 %1168 }
 0xae4   :  { %3097 = vmatmul.mubr.msk.bf16.vlgmr.msra.gmra.mxu1 %vm185_vm2, %v1169_v49  ;;  %3132 = vmatprep.subr.bf16.mxu0 %v3530_v0 }
 0xae5   :  { %3109 = vmatpush3.bf16.msra.mxu1 %v3764_v35  ;;  %3112 = vmatprep.mubr.msk.bf16.mxu1 %vm3531_vm0, %v3530_v0 }
 0xae6   :  { %3121 = vmatmul.mubr.msk.bf16.vlgmr.msra.gmra.mxu0 %vm185_vm2, %v1169_v49  ;;  %3110 = vmatprep.subr.bf16.mxu1 %v3530_v0 }
 0xae7   :  { %3133 = vmatpush3.bf16.msra.mxu0 %v3669_v28  ;;  %3136 = vmatprep.mubr.msk.bf16.mxu0 %vm3531_vm0, %v3530_v0  ;;  %v155_v28 = vadd.f32 %v3652_v8, %v3721_v40 }
 0xae8   :  { %3134 = vmatprep.subr.bf16.mxu0 %v3530_v0 }
 0xae9   :  { %3111 = vmatpush3.bf16.msra.mxu1 %v3781_v44 }
 0xaea   :  { %3124 = vmatprep.subr.bf16.mxu1 %v3530_v0 }
 0xaeb   :  { %v1281_v51 = vpop.permute.xlu1 %1280  ;;  %3135 = vmatpush3.bf16.msra.mxu0 %v3676_v29 }
 0xaec   :  { %3113 = vmatmul.mubr.msk.bf16.vlgmr.msra.gmra.mxu1 %vm185_vm2, %v1281_v51  ;;  %3148 = vmatprep.subr.bf16.mxu0 %v3530_v0 }
 0xaed   :  { %3125 = vmatpush3.bf16.msra.mxu1 %v3620_v2  ;;  %3128 = vmatprep.mubr.msk.bf16.mxu1 %vm3531_vm0, %v3530_v0 }
 0xaee   :  { %3126 = vmatprep.subr.bf16.mxu1 %v3530_v0 }
 0xaf1   :  { %3127 = vmatpush3.bf16.msra.mxu1 %v3634_v5 }
 0xaf2   :  { %3140 = vmatprep.subr.bf16.mxu1 %v3530_v0 }
 0xb96   :  { %v1135_v52 = vpop.f32.mrf.mxu0 }
 0xb97   :  { %v1141_v29 = vadd.f32 %v1135_v52, %v155_v28 }
 0xb98   :  { %v3090_v55 = vpop.f32.mrf.mxu0 }
 0xb99   :  { %3395 = vtanh.f32 %v1141_v29  ;;  %v2788_v19 = vmul.f32 -1.442695, %v1141_v29 }
 0xb9a   :  { %v1138_v56 = vpop.f32.mrf.mxu0 }
 0xb9c   :  { %v3091_v57 = vpop.f32.mrf.mxu0 }
 0xb9e   :  { %v1247_v18 = vpop.f32.mrf.mxu0 }
 0xba0   :  { %v3106_v2 = vpop.f32.mrf.mxu0 }
 0xba2   :  { %v1250_v59 = vpop.f32.mrf.mxu0 }
 0xba4   :  { %v1207_v21 = vpop.f32.mrf.mxu1  ;;  %v3107_v60 = vpop.f32.mrf.mxu0 }
 0xba5   :  { %v1248_v61 = vadd.f32 %v1247_v18, %v1207_v21 }
 0xba6   :  { %v3396_v7 = vpop.eup %3395  ;;  %v3098_v62 = vpop.f32.mrf.mxu1 }
 0xba7   :  { %v1359_v5 = vpop.f32.mrf.mxu0  ;;  %v1253_v1 = vadd.f32 %v3731_v54, %v1248_v61  ;;  %1151 = vrot.lane.b32.xlu0 %v3396_v7, %s3533_s24 }
 0xba8   :  { %v1210_v8 = vpop.f32.mrf.mxu1 }
 0xba9   :  { %v3122_v40 = vpop.f32.mrf.mxu0  ;;  %3397 = vtanh.f32 %v1253_v1  ;;  %v2791_v22 = vmul.f32 -1.442695, %v1253_v1 }
 0xbaa   :  { %v3099_v3 = vpop.f32.mrf.mxu1 }
 0xbab   :  { %v1362_v4 = vpop.f32.mrf.mxu0  ;;  %v4004_v3 = vld [vmem:[%s4286_s2 + $0x8] sm:$0xff]  }
 0xbac   :  { %v1319_v9 = vpop.f32.mrf.mxu1  ;;  %v4013_v4 = vld [vmem:[%s4286_s2] sm:$0xff]  }
 0xbad   :  { %v3123_v10 = vpop.f32.mrf.mxu0  ;;  %v1360_v11 = vadd.f32 %v1359_v5, %v1319_v9  ;;  %v4020_v9 = vld [vmem:[%s4288_s3] ss:$0 sm:$0xff] }
 0xbae   :  { %v3114_v12 = vpop.f32.mrf.mxu1  ;;  %v158_v10 = vadd.f32 %v4020_v9, %v3725_v42 }
 0xbaf   :  { %v1365_v13 = vadd.f32 %v3811_v63, %v1360_v11 }
 0xbb0   :  { %v1322_v14 = vpop.f32.mrf.mxu1 }
 0xbb1   :  { %3399 = vtanh.f32 %v1365_v13  ;;  %v2794_v25 = vmul.f32 -1.442695, %v1365_v13 }
 0xbb2   :  { %v3115_v15 = vpop.f32.mrf.mxu1  ;;  %3401 = vpow2.f32 %v2788_v19 }
 0xbb3   :  { %3403 = vpow2.f32 %v2791_v22 }
 0xbb6   :  { %v3398_v16 = vpop.eup %3397 }
 0xbb7   :  { %1263 = vrot.lane.b32.xlu1 %v3398_v16, %s3533_s24 }
 0xbbe   :  { %v3400_v17 = vpop.eup %3399 }
 0xbbf   :  { %1375 = vrot.lane.b32.xlu0 %v3400_v17, %s3533_s24  ;;  %v3402_v23 = vpop.eup %3401 }
 0xbc0   :  { %v1145_v26 = vadd.f32 1.0, %v3402_v23  ;;  %v3404_v27 = vpop.eup %3403 }
 0xbc1   :  { %v1257_v50 = vadd.f32 1.0, %v3404_v27 }
 0xbc2   :  { %3405 = vrcp.f32 %v1145_v26 }
 0xbc3   :  { %3407 = vpow2.f32 %v2794_v25 }
 0xbc4   :  { %3409 = vrcp.f32 %v1257_v50 }
 0xbcf   :  { %v3406_v31 = vpop.eup %3405 }
 0xbd0   :  { %v3408_v38 = vpop.eup %3407  ;;  %v1149_v49 = vmul.f32 %v3406_v31, %v3882_v20 }
 0xbd1   :  { %v1369_v37 = vadd.f32 1.0, %v3408_v38  ;;  %v3410_v6 = vpop.eup %3409 }
 0xbd2   :  { %v1261_v52 = vmul.f32 %v3410_v6, %v3886_v24 }
 0xbd3   :  { %3411 = vrcp.f32 %v1369_v37 }
 0xbe0   :  { %v3412_v46 = vpop.eup %3411 }
 0xbe1   :  { %v1373_v57 = vmul.f32 %v3412_v46, %v3891_v30 }
 0xc19   :  { %v1152_v53 = vpop.permute.xlu0 %1151 }
 0xc1a   :  { %v1154_v32 = vmul.f32 %v3406_v31, %v1152_v53 }
 0xc1c   :  { %1156 = vrot.lane.b32.xlu1 %v1154_v32, %s3534_s25 }
 0xc29   :  { %v1264_v45 = vpop.permute.xlu1 %1263 }
 0xc2a   :  { %v1266_v58 = vmul.f32 %v3410_v6, %v1264_v45 }
 0xc2c   :  { %1268 = vrot.lane.b32.xlu0 %v1266_v58, %s3534_s25 }
 0xc31   :  { %v1376_v47 = vpop.permute.xlu0 %1375 }
 0xc32   :  { %v1378_v48 = vmul.f32 %v3412_v46, %v1376_v47 }
 0xc34   :  { %1380 = vrot.lane.b32.xlu1 %v1378_v48, %s3534_s25 }
 0xc8e   :  { %v1157_v51 = vpop.permute.xlu1 %1156 }
 0xc8f   :  { %v3945_v28 = vadd.f32 %v1157_v51, %v1149_v49 }
 0xc91   :  { %3413 = vtanh.f32 %v3945_v28 }
 0xc9e   :  { %v3414_v29 = vpop.eup %3413  ;;  %v1269_v55 = vpop.permute.xlu0 %1268 }
 0xc9f   :  { %v3949_v56 = vadd.f32 %v1269_v55, %v1261_v52  ;;  %1162 = vrot.lane.b32.xlu0 %v3414_v29, %s3533_s24 }
 0xca1   :  { %3415 = vtanh.f32 %v3949_v56 }
 0xca6   :  { %v1381_v18 = vpop.permute.xlu1 %1380 }
 0xca7   :  { %v3954_v2 = vadd.f32 %v1381_v18, %v1373_v57 }
 0xca9   :  { %3417 = vtanh.f32 %v3954_v2 }
 0xcae   :  { %v3416_v20 = vpop.eup %3415 }
 0xcaf   :  { %1274 = vrot.lane.b32.xlu1 %v3416_v20, %s3533_s24 }
 0xcb6   :  { %v3418_v59 = vpop.eup %3417 }
 0xcb7   :  { %1386 = vrot.lane.b32.xlu0 %v3418_v59, %s3533_s24 }
 0xd11   :  { %v1163_v24 = vpop.permute.xlu0 %1162 }
 0xd12   :  { %v1165_v21 = vmul.f32 %v3406_v31, %v1163_v24 }
 0xd14   :  { %v1390_v60 = vpack.c.bf16 %v1165_v21, %v1165_v21 }
 0xd16   :  { %1392 = vrot.lane.b32.xlu1 %v1390_v60, %s3534_s25 }
 0xd21   :  { %v1275_v61 = vpop.permute.xlu1 %1274 }
 0xd22   :  { %v1277_v7 = vmul.f32 %v3410_v6, %v1275_v61 }
 0xd24   :  { %v1462_v62 = vpack.c.bf16 %v1277_v7, %v1277_v7 }
 0xd26   :  { %1464 = vrot.lane.b32.xlu0 %v1462_v62, %s3534_s25 }
 0xd29   :  { %v1387_v30 = vpop.permute.xlu0 %1386 }
 0xd2a   :  { %v1389_v5 = vmul.f32 %v3412_v46, %v1387_v30 }
 0xd2c   :  { %v1574_v1 = vpack.c.bf16 %v1389_v5, %v1389_v5 }
 0xd2e   :  { %1576 = vrot.lane.b32.xlu1 %v1574_v1, %s3534_s25 }
 0xd88   :  { %v1393_v8 = vpop.permute.xlu1 %1392 }
 0xd89   :  { %3129 = vmatmul.mubr.msk.bf16.vlgmr.msra.gmra.mxu1 %vm185_vm2, %v1393_v8 }
 0xd8a   :  { %3141 = vmatpush3.bf16.msra.mxu1 %v3696_v34  ;;  %3144 = vmatprep.mubr.msk.bf16.mxu1 %vm3531_vm0, %v3530_v0 }
 0xd8b   :  { %3142 = vmatprep.subr.bf16.mxu1 %v3530_v0 }
 0xd8e   :  { %3143 = vmatpush3.bf16.msra.mxu1 %v3703_v36  ;;  %v3985_v36 = vld [vmem:[%s4289_s5 + $0x8] sm:$0xff]  }
 0xd8f   :  { %3156 = vmatprep.subr.bf16.mxu1 %v3530_v0 }
 0xd91   :  { %3145 = vmatmul.mubr.msk.bf16.vlgmr.msra.gmra.mxu1 %vm185_vm2, %v1393_v8 }
 0xd92   :  { %3157 = vmatpush3.bf16.msra.mxu1 %v3758_v33  ;;  %3160 = vmatprep.mubr.msk.bf16.mxu1 %vm3531_vm0, %v3530_v0 }
 0xd93   :  { %3158 = vmatprep.subr.bf16.mxu1 %v3530_v0 }
 0xd96   :  { %3159 = vmatpush3.bf16.msra.mxu1 %v3771_v43 }
 0xd97   :  { %3172 = vmatprep.subr.bf16.mxu1 %v3530_v0 }
 0xd98   :  { %v1465_v34 = vpop.permute.xlu0 %1464 }
 0xd99   :  { %3137 = vmatmul.mubr.msk.bf16.vlgmr.msra.gmra.mxu0 %vm185_vm2, %v1465_v34  ;;  %3161 = vmatmul.mubr.msk.bf16.vlgmr.msra.gmra.mxu1 %vm185_vm2, %v1465_v34 }
 0xd9a   :  { %3149 = vmatpush3.bf16.msra.mxu0 %v3764_v35  ;;  %3152 = vmatprep.mubr.msk.bf16.mxu0 %vm3531_vm0, %v3530_v0  ;;  %v3996_v35 = vld [vmem:[%s4289_s5] sm:$0xff]  }
 0xd9b   :  { %3150 = vmatprep.subr.bf16.mxu0 %v3530_v0  ;;  %3173 = vmatpush3.bf16.msra.mxu1 %v3985_v36 }
 0xd9c   :  { %3174 = vmatprep.subr.bf16.mxu1 %v3530_v0  ;;  %3176 = vmatprep.mubr.msk.bf16.mxu1 %vm3531_vm0, %v3530_v0 }
 0xd9e   :  { %3151 = vmatpush3.bf16.msra.mxu0 %v3781_v44 }
 0xd9f   :  { %3164 = vmatprep.subr.bf16.mxu0 %v3530_v0  ;;  %3175 = vmatpush3.bf16.msra.mxu1 %v3996_v35 }
 0xda0   :  { %v1577_v40 = vpop.permute.xlu1 %1576  ;;  %3188 = vmatprep.subr.bf16.mxu1 %v3530_v0 }
 0xda1   :  { %3153 = vmatmul.mubr.msk.bf16.vlgmr.msra.gmra.mxu0 %vm185_vm2, %v1577_v40 }
 0xda2   :  { %3165 = vmatpush3.bf16.msra.mxu0 %v4004_v3  ;;  %3168 = vmatprep.mubr.msk.bf16.mxu0 %vm3531_vm0, %v3530_v0 }
 0xda3   :  { %3166 = vmatprep.subr.bf16.mxu0 %v3530_v0 }
 0xda6   :  { %3167 = vmatpush3.bf16.msra.mxu0 %v4013_v4 }
 0xda7   :  { %3180 = vmatprep.subr.bf16.mxu0 %v3530_v0 }
 0xe49   :  { %v1431_v11 = vpop.f32.mrf.mxu1 }
 0xe4a   :  { %v1437_v12 = vadd.f32 %v1431_v11, %v158_v10 }
 0xe4b   :  { %v3130_v13 = vpop.f32.mrf.mxu1 }
 0xe4c   :  { %3419 = vtanh.f32 %v1437_v12 }
 0xe4d   :  { %v1434_v14 = vpop.f32.mrf.mxu1 }
 0xe4f   :  { %v3131_v15 = vpop.f32.mrf.mxu1 }
 0xe51   :  { %v1543_v16 = vpop.f32.mrf.mxu1 }
 0xe53   :  { %v3146_v17 = vpop.f32.mrf.mxu1 }
 0xe55   :  { %v1546_v19 = vpop.f32.mrf.mxu1 }
 0xe57   :  { %v3147_v22 = vpop.f32.mrf.mxu1 }
 0xe59   :  { %v3420_v23 = vpop.eup %3419  ;;  %v1503_v26 = vpop.f32.mrf.mxu0 }
 0xe5a   :  { %v1655_v25 = vpop.f32.mrf.mxu1  ;;  %v1544_v27 = vadd.f32 %v1543_v16, %v1503_v26  ;;  %1447 = vrot.lane.b32.xlu0 %v3420_v23, %s3533_s24 }
 0xe5b   :  { %v3138_v50 = vpop.f32.mrf.mxu0 }
 0xe5c   :  { %v3162_v31 = vpop.f32.mrf.mxu1  ;;  %v1549_v42 = vadd.f32 %v3731_v54, %v1544_v27  ;;  %v2796_v54 = vmul.f32 -1.442695, %v1437_v12 }
 0xe5d   :  { %v1506_v53 = vpop.f32.mrf.mxu0 }
 0xe5e   :  { %v1658_v32 = vpop.f32.mrf.mxu1  ;;  %3421 = vtanh.f32 %v1549_v42  ;;  %v2799_v29 = vmul.f32 -1.442695, %v1549_v42  ;;  %v4054_v53 = vld [vmem:[%s4290_s4 + $0x8] sm:$0xff]  }
 0xe5f   :  { %v3139_v38 = vpop.f32.mrf.mxu0  ;;  %v4063_v32 = vld [vmem:[%s4290_s4] sm:$0xff]  }
 0xe60   :  { %v3163_v37 = vpop.f32.mrf.mxu1 }
 0xe61   :  { %v1615_v6 = vpop.f32.mrf.mxu0  ;;  %v4079_v37 = vld [vmem:[%s4293_s8 + $0x8] sm:$0xff]  }
 0xe62   :  { %v1656_v45 = vadd.f32 %v1655_v25, %v1615_v6 }
 0xe63   :  { %v3154_v58 = vpop.f32.mrf.mxu0 }
 0xe64   :  { %v1661_v46 = vadd.f32 %v3811_v63, %v1656_v45 }
 0xe65   :  { %v1618_v47 = vpop.f32.mrf.mxu0 }
 0xe66   :  { %3423 = vtanh.f32 %v1661_v46  ;;  %v2802_v57 = vmul.f32 -1.442695, %v1661_v46 }
 0xe67   :  { %v3155_v48 = vpop.f32.mrf.mxu0  ;;  %3425 = vpow2.f32 %v2796_v54 }
 0xe68   :  { %3427 = vpow2.f32 %v2799_v29 }
 0xe6b   :  { %v3422_v49 = vpop.eup %3421 }
 0xe6c   :  { %1559 = vrot.lane.b32.xlu1 %v3422_v49, %s3533_s24 }
 0xe73   :  { %v3424_v51 = vpop.eup %3423 }
 0xe74   :  { %1671 = vrot.lane.b32.xlu0 %v3424_v51, %s3533_s24  ;;  %v3426_v52 = vpop.eup %3425 }
 0xe75   :  { %v1441_v55 = vadd.f32 1.0, %v3426_v52  ;;  %v3428_v18 = vpop.eup %3427 }
 0xe76   :  { %v1553_v21 = vadd.f32 1.0, %v3428_v18 }
 0xe77   :  { %3429 = vrcp.f32 %v1441_v55 }
 0xe78   :  { %3431 = vpow2.f32 %v2802_v57 }
 0xe79   :  { %3433 = vrcp.f32 %v1553_v21 }
 0xe84   :  { %v3430_v20 = vpop.eup %3429 }
 0xe85   :  { %v3432_v60 = vpop.eup %3431  ;;  %v1445_v34 = vmul.f32 %v3430_v20, %v3945_v28 }
 0xe86   :  { %v1665_v61 = vadd.f32 1.0, %v3432_v60  ;;  %v3434_v7 = vpop.eup %3433 }
 0xe87   :  { %v1557_v12 = vmul.f32 %v3434_v7, %v3949_v56 }
 0xe88   :  { %3435 = vrcp.f32 %v1665_v61 }
 0xe95   :  { %v3436_v5 = vpop.eup %3435 }
 0xe96   :  { %v1669_v15 = vmul.f32 %v3436_v5, %v3954_v2 }
 0xecc   :  { %v1448_v59 = vpop.permute.xlu0 %1447 }
 0xecd   :  { %v1450_v24 = vmul.f32 %v3430_v20, %v1448_v59 }
 0xecf   :  { %1452 = vrot.lane.b32.xlu1 %v1450_v24, %s3534_s25 }
 0xede   :  { %v1560_v62 = vpop.permute.xlu1 %1559 }
 0xedf   :  { %v1562_v30 = vmul.f32 %v3434_v7, %v1560_v62 }
 0xee1   :  { %1564 = vrot.lane.b32.xlu0 %v1562_v30, %s3534_s25 }
 0xee6   :  { %v1672_v1 = vpop.permute.xlu0 %1671 }
 0xee7   :  { %v1674_v8 = vmul.f32 %v3436_v5, %v1672_v1 }
 0xee9   :  { %1676 = vrot.lane.b32.xlu1 %v1674_v8, %s3534_s25 }
 0xf41   :  { %v1453_v40 = vpop.permute.xlu1 %1452 }
 0xf42   :  { %v4033_v10 = vadd.f32 %v1453_v40, %v1445_v34 }
 0xf44   :  { %3437 = vtanh.f32 %v4033_v10 }
 0xf51   :  { %v3438_v11 = vpop.eup %3437 }
 0xf52   :  { %1458 = vrot.lane.b32.xlu0 %v3438_v11, %s3533_s24 }
 0xf53   :  { %v1565_v13 = vpop.permute.xlu0 %1564 }
 0xf54   :  { %v4038_v14 = vadd.f32 %v1565_v13, %v1557_v12 }
 0xf56   :  { %3439 = vtanh.f32 %v4038_v14 }
 0xf5b   :  { %v1677_v16 = vpop.permute.xlu1 %1676 }
 0xf5c   :  { %v4042_v17 = vadd.f32 %v1677_v16, %v1669_v15 }
 0xf5e   :  { %3441 = vtanh.f32 %v4042_v17 }
 0xf63   :  { %v3440_v28 = vpop.eup %3439 }
 0xf64   :  { %1570 = vrot.lane.b32.xlu1 %v3440_v28, %s3533_s24 }
 0xf6b   :  { %v3442_v19 = vpop.eup %3441 }
 0xf6c   :  { %1682 = vrot.lane.b32.xlu0 %v3442_v19, %s3533_s24 }
 0xfc4   :  { %v1459_v22 = vpop.permute.xlu0 %1458 }
 0xfc5   :  { %v1461_v56 = vmul.f32 %v3430_v20, %v1459_v22 }
 0xfc7   :  { %v1686_v23 = vpack.c.bf16 %v1461_v56, %v1461_v56 }
 0xfc9   :  { %1688 = vrot.lane.b32.xlu1 %v1686_v23, %s3534_s25 }
 0xfd6   :  { %v1571_v26 = vpop.permute.xlu1 %1570 }
 0xfd7   :  { %v1573_v25 = vmul.f32 %v3434_v7, %v1571_v26 }
 0xfd9   :  { %v1758_v27 = vpack.c.bf16 %v1573_v25, %v1573_v25 }
 0xfdb   :  { %1760 = vrot.lane.b32.xlu0 %v1758_v27, %s3534_s25 }
 0xfde   :  { %v1683_v2 = vpop.permute.xlu0 %1682 }
 0xfdf   :  { %v1685_v50 = vmul.f32 %v3436_v5, %v1683_v2 }
 0xfe1   :  { %v1870_v31 = vpack.c.bf16 %v1685_v50, %v1685_v50 }
 0xfe3   :  { %1872 = vrot.lane.b32.xlu1 %v1870_v31, %s3534_s25 }
0x103b   :  { %v1689_v42 = vpop.permute.xlu1 %1688 }
0x103c   :  { %3169 = vmatmul.mubr.msk.bf16.vlgmr.msra.gmra.mxu0 %vm185_vm2, %v1689_v42 }
0x103d   :  { %3181 = vmatpush3.bf16.msra.mxu0 %v4054_v53  ;;  %3184 = vmatprep.mubr.msk.bf16.mxu0 %vm3531_vm0, %v3530_v0 }
0x103e   :  { %3182 = vmatprep.subr.bf16.mxu0 %v3530_v0 }
0x1041   :  { %3183 = vmatpush3.bf16.msra.mxu0 %v4063_v32 }
0x1042   :  { %3196 = vmatprep.subr.bf16.mxu0 %v3530_v0 }
0x1044   :  { %3185 = vmatmul.mubr.msk.bf16.vlgmr.msra.gmra.mxu0 %vm185_vm2, %v1689_v42 }
0x1045   :  { %3197 = vmatpush3.bf16.msra.mxu0 %v3758_v33  ;;  %3200 = vmatprep.mubr.msk.bf16.mxu0 %vm3531_vm0, %v3530_v0 }
0x1046   :  { %3198 = vmatprep.subr.bf16.mxu0 %v3530_v0 }
0x1049   :  { %3199 = vmatpush3.bf16.msra.mxu0 %v3771_v43  ;;  %v163_v43 = vadd.f32 %v4020_v9, %v3719_v39  ;;  %v4106_v39 = vld [vmem:[%s4291_s6] ss:$0 sm:$0xff] }
0x104a   :  { %3212 = vmatprep.subr.bf16.mxu0 %v3530_v0 }
0x104d   :  { %v1761_v38 = vpop.permute.xlu0 %1760 }
0x104e   :  { %3177 = vmatmul.mubr.msk.bf16.vlgmr.msra.gmra.mxu1 %vm185_vm2, %v1761_v38  ;;  %3201 = vmatmul.mubr.msk.bf16.vlgmr.msra.gmra.mxu0 %vm185_vm2, %v1761_v38 }
0x104f   :  { %3189 = vmatpush3.bf16.msra.mxu1 %v4079_v37  ;;  %3192 = vmatprep.mubr.msk.bf16.mxu1 %vm3531_vm0, %v3530_v0 }
0x1050   :  { %3190 = vmatprep.subr.bf16.mxu1 %v3530_v0  ;;  %3213 = vmatpush3.bf16.msra.mxu0 %v3985_v36 }
0x1051   :  { %3214 = vmatprep.subr.bf16.mxu0 %v3530_v0  ;;  %3216 = vmatprep.mubr.msk.bf16.mxu0 %vm3531_vm0, %v3530_v0 }
0x1053   :  { %3191 = vmatpush3.bf16.msra.mxu1 %v3781_v44 }
0x1054   :  { %3204 = vmatprep.subr.bf16.mxu1 %v3530_v0  ;;  %3215 = vmatpush3.bf16.msra.mxu0 %v3996_v35 }
0x1055   :  { %v1873_v33 = vpop.permute.xlu1 %1872  ;;  %3228 = vmatprep.subr.bf16.mxu0 %v3530_v0 }
0x1056   :  { %3193 = vmatmul.mubr.msk.bf16.vlgmr.msra.gmra.mxu1 %vm185_vm2, %v1873_v33 }
0x1057   :  { %3205 = vmatpush3.bf16.msra.mxu1 %v4004_v3  ;;  %3208 = vmatprep.mubr.msk.bf16.mxu1 %vm3531_vm0, %v3530_v0 }
0x1058   :  { %3206 = vmatprep.subr.bf16.mxu1 %v3530_v0 }
0x105b   :  { %3207 = vmatpush3.bf16.msra.mxu1 %v4013_v4 }
0x105c   :  { %3220 = vmatprep.subr.bf16.mxu1 %v3530_v0 }
0x10fc   :  { %v1727_v44 = vpop.f32.mrf.mxu0 }
0x10fd   :  { %v1733_v6 = vadd.f32 %v1727_v44, %v163_v43 }
0x10fe   :  { %v3170_v45 = vpop.f32.mrf.mxu0 }
0x10ff   :  { %3443 = vtanh.f32 %v1733_v6  ;;  %v2804_v8 = vmul.f32 -1.442695, %v1733_v6 }
0x1100   :  { %v1730_v58 = vpop.f32.mrf.mxu0 }
0x1102   :  { %v3171_v46 = vpop.f32.mrf.mxu0 }
0x1104   :  { %v1839_v47 = vpop.f32.mrf.mxu0 }
0x1106   :  { %v3186_v3 = vpop.f32.mrf.mxu0 }
0x1108   :  { %v1842_v48 = vpop.f32.mrf.mxu0 }
0x110a   :  { %v3187_v49 = vpop.f32.mrf.mxu0 }
0x110c   :  { %v3444_v51 = vpop.eup %3443 }
0x110d   :  { %1743 = vrot.lane.b32.xlu0 %v3444_v51, %s3533_s24 }
0x110e   :  { %v1799_v54 = vpop.f32.mrf.mxu1  ;;  %v1951_v4 = vpop.f32.mrf.mxu0 }
0x110f   :  { %v1840_v52 = vadd.f32 %v1839_v47, %v1799_v54 }
0x1110   :  { %v3178_v29 = vpop.f32.mrf.mxu1  ;;  %v3202_v55 = vpop.f32.mrf.mxu0 }
0x1111   :  { %v1845_v57 = vadd.f32 %v4106_v39, %v1840_v52  ;;  %v4144_v29 = vld [vmem:[%s4292_s7 + $0x8] sm:$0xff]   ;;  %v4153_v55 = vld [vmem:[%s4292_s7] sm:$0xff]  }
0x1112   :  { %v1802_v18 = vpop.f32.mrf.mxu1  ;;  %v1954_v20 = vpop.f32.mrf.mxu0 }
0x1113   :  { %3445 = vtanh.f32 %v1845_v57  ;;  %v2807_v11 = vmul.f32 -1.442695, %v1845_v57  ;;  %v4170_v18 = vld [vmem:[%s4293_s8] sm:$0xff]  }
0x1114   :  { %v3179_v59 = vpop.f32.mrf.mxu1  ;;  %v3203_v24 = vpop.f32.mrf.mxu0 }
0x1116   :  { %v1911_v21 = vpop.f32.mrf.mxu1 }
0x1117   :  { %v1952_v60 = vadd.f32 %v1951_v4, %v1911_v21 }
0x1118   :  { %v3194_v61 = vpop.f32.mrf.mxu1 }
0x1119   :  { %v1957_v7 = vadd.f32 %v3811_v63, %v1952_v60 }
0x111a   :  { %v1914_v62 = vpop.f32.mrf.mxu1 }
0x111b   :  { %3447 = vtanh.f32 %v1957_v7  ;;  %v2810_v12 = vmul.f32 -1.442695, %v1957_v7 }
0x111c   :  { %v3195_v30 = vpop.f32.mrf.mxu1  ;;  %3449 = vpow2.f32 %v2804_v8 }
0x1120   :  { %v3446_v5 = vpop.eup %3445 }
0x1121   :  { %1855 = vrot.lane.b32.xlu1 %v3446_v5, %s3533_s24 }
0x1128   :  { %v3448_v1 = vpop.eup %3447 }
0x1129   :  { %1967 = vrot.lane.b32.xlu0 %v3448_v1, %s3533_s24  ;;  %v3450_v34 = vpop.eup %3449 }
0x112a   :  { %v1737_v40 = vadd.f32 1.0, %v3450_v34 }
0x112c   :  { %3451 = vrcp.f32 %v1737_v40 }
0x112d   :  { %3453 = vpow2.f32 %v2807_v11 }
0x112e   :  { %3455 = vpow2.f32 %v2810_v12 }
0x1139   :  { %v3452_v13 = vpop.eup %3451 }
0x113a   :  { %v3454_v15 = vpop.eup %3453  ;;  %v1741_v50 = vmul.f32 %v3452_v13, %v4033_v10 }
0x113b   :  { %v1849_v28 = vadd.f32 1.0, %v3454_v15  ;;  %v3456_v19 = vpop.eup %3455 }
0x113c   :  { %v1961_v22 = vadd.f32 1.0, %v3456_v19 }
0x113d   :  { %3457 = vrcp.f32 %v1849_v28 }
0x113e   :  { %3459 = vrcp.f32 %v1961_v22 }
0x114a   :  { %v3458_v56 = vpop.eup %3457 }
0x114b   :  { %v3460_v25 = vpop.eup %3459  ;;  %v1853_v33 = vmul.f32 %v3458_v56, %v4038_v14 }
0x114c   :  { %v1965_v6 = vmul.f32 %v3460_v25, %v4042_v17 }
0x117f   :  { %v1744_v63 = vpop.permute.xlu0 %1743 }
0x1180   :  { %v1746_v16 = vmul.f32 %v3452_v13, %v1744_v63 }
0x1182   :  { %1748 = vrot.lane.b32.xlu1 %v1746_v16, %s3534_s25  ;;  %v4190_v16 = vld [vmem:[%s4294_s9] ss:$0 sm:$0xff] }
0x1193   :  { %v1856_v23 = vpop.permute.xlu1 %1855 }
0x1194   :  { %v1858_v26 = vmul.f32 %v3458_v56, %v1856_v23 }
0x1196   :  { %1860 = vrot.lane.b32.xlu0 %v1858_v26, %s3534_s25 }
0x119b   :  { %v1968_v27 = vpop.permute.xlu0 %1967 }
0x119c   :  { %v1970_v2 = vmul.f32 %v3460_v25, %v1968_v27 }
0x119e   :  { %1972 = vrot.lane.b32.xlu1 %v1970_v2, %s3534_s25 }
0x11f4   :  { %v1749_v31 = vpop.permute.xlu1 %1748 }
0x11f5   :  { %v4116_v42 = vadd.f32 %v1749_v31, %v1741_v50 }
0x11f7   :  { %3461 = vtanh.f32 %v4116_v42 }
0x1204   :  { %v3462_v38 = vpop.eup %3461 }
0x1205   :  { %1754 = vrot.lane.b32.xlu0 %v3462_v38, %s3533_s24 }
0x1208   :  { %v1861_v43 = vpop.permute.xlu0 %1860 }
0x1209   :  { %v4121_v44 = vadd.f32 %v1861_v43, %v1853_v33 }
0x120b   :  { %3463 = vtanh.f32 %v4121_v44 }
0x1210   :  { %v1973_v45 = vpop.permute.xlu1 %1972 }
0x1211   :  { %v4125_v58 = vadd.f32 %v1973_v45, %v1965_v6 }
0x1213   :  { %3465 = vtanh.f32 %v4125_v58 }
0x1218   :  { %v3464_v10 = vpop.eup %3463 }
0x1219   :  { %1866 = vrot.lane.b32.xlu1 %v3464_v10, %s3533_s24 }
0x1220   :  { %v3466_v46 = vpop.eup %3465 }
0x1221   :  { %1978 = vrot.lane.b32.xlu0 %v3466_v46, %s3533_s24 }
0x1277   :  { %v1755_v47 = vpop.permute.xlu0 %1754 }
0x1278   :  { %v1757_v14 = vmul.f32 %v3452_v13, %v1755_v47 }
0x127a   :  { %v1982_v3 = vpack.c.bf16 %v1757_v14, %v1757_v14 }
0x127c   :  { %1984 = vrot.lane.b32.xlu1 %v1982_v3, %s3534_s25 }
0x128b   :  { %v1867_v48 = vpop.permute.xlu1 %1866 }
0x128c   :  { %v1869_v49 = vmul.f32 %v3458_v56, %v1867_v48 }
0x128e   :  { %v2054_v51 = vpack.c.bf16 %v1869_v49, %v1869_v49 }
0x1290   :  { %2056 = vrot.lane.b32.xlu0 %v2054_v51, %s3534_s25 }
0x1293   :  { %v1979_v17 = vpop.permute.xlu0 %1978 }
0x1294   :  { %v1981_v54 = vmul.f32 %v3460_v25, %v1979_v17 }
0x1296   :  { %v2166_v4 = vpack.c.bf16 %v1981_v54, %v1981_v54 }
0x1298   :  { %2168 = vrot.lane.b32.xlu1 %v2166_v4, %s3534_s25 }
0x12ee   :  { %v1985_v52 = vpop.permute.xlu1 %1984 }
0x12ef   :  { %3209 = vmatmul.mubr.msk.bf16.vlgmr.msra.gmra.mxu1 %vm185_vm2, %v1985_v52 }
0x12f0   :  { %3221 = vmatpush3.bf16.msra.mxu1 %v4054_v53  ;;  %3224 = vmatprep.mubr.msk.bf16.mxu1 %vm3531_vm0, %v3530_v0 }
0x12f1   :  { %3222 = vmatprep.subr.bf16.mxu1 %v3530_v0 }
0x12f4   :  { %3223 = vmatpush3.bf16.msra.mxu1 %v4063_v32 }
0x12f5   :  { %3236 = vmatprep.subr.bf16.mxu1 %v3530_v0 }
0x12f7   :  { %3225 = vmatmul.mubr.msk.bf16.vlgmr.msra.gmra.mxu1 %vm185_vm2, %v1985_v52 }
0x12f8   :  { %3237 = vmatpush3.bf16.msra.mxu1 %v4144_v29  ;;  %3240 = vmatprep.mubr.msk.bf16.mxu1 %vm3531_vm0, %v3530_v0 }
0x12f9   :  { %3238 = vmatprep.subr.bf16.mxu1 %v3530_v0 }
0x12fc   :  { %3239 = vmatpush3.bf16.msra.mxu1 %v4153_v55 }
0x12fd   :  { %3252 = vmatprep.subr.bf16.mxu1 %v3530_v0 }
0x1302   :  { %v2057_v57 = vpop.permute.xlu0 %2056 }
0x1303   :  { %3217 = vmatmul.mubr.msk.bf16.vlgmr.msra.gmra.mxu0 %vm185_vm2, %v2057_v57  ;;  %3241 = vmatmul.mubr.msk.bf16.vlgmr.msra.gmra.mxu1 %vm185_vm2, %v2057_v57 }
0x1304   :  { %3229 = vmatpush3.bf16.msra.mxu0 %v4079_v37  ;;  %3232 = vmatprep.mubr.msk.bf16.mxu0 %vm3531_vm0, %v3530_v0 }
0x1305   :  { %3230 = vmatprep.subr.bf16.mxu0 %v3530_v0  ;;  %3253 = vmatpush3.bf16.msra.mxu1 %v4054_v53  ;;  %v166_v53 = vadd.f32 %v4020_v9, %v3723_v41 }
0x1306   :  { %3254 = vmatprep.subr.bf16.mxu1 %v3530_v0  ;;  %3256 = vmatprep.mubr.msk.bf16.mxu1 %vm3531_vm0, %v3530_v0 }
0x1308   :  { %3231 = vmatpush3.bf16.msra.mxu0 %v4170_v18 }
0x1309   :  { %3255 = vmatpush3.bf16.msra.mxu1 %v4063_v32  ;;  %3244 = vmatprep.subr.bf16.mxu0 %v3530_v0 }
0x130a   :  { %v2169_v20 = vpop.permute.xlu1 %2168  ;;  %3268 = vmatprep.subr.bf16.mxu1 %v3530_v0 }
0x130b   :  { %3233 = vmatmul.mubr.msk.bf16.vlgmr.msra.gmra.mxu0 %vm185_vm2, %v2169_v20 }
0x130c   :  { %3245 = vmatpush3.bf16.msra.mxu0 %v3985_v36  ;;  %3248 = vmatprep.mubr.msk.bf16.mxu0 %vm3531_vm0, %v3530_v0 }
0x130d   :  { %3246 = vmatprep.subr.bf16.mxu0 %v3530_v0 }
0x1310   :  { %3247 = vmatpush3.bf16.msra.mxu0 %v3996_v35 }
0x1311   :  { %3260 = vmatprep.subr.bf16.mxu0 %v3530_v0 }
0x13af   :  { %v2023_v32 = vpop.f32.mrf.mxu1 }
0x13b0   :  { %v2029_v59 = vadd.f32 %v2023_v32, %v166_v53 }
0x13b1   :  { %v3210_v24 = vpop.f32.mrf.mxu1 }
0x13b2   :  { %3467 = vtanh.f32 %v2029_v59  ;;  %v2812_v26 = vmul.f32 -1.442695, %v2029_v59 }
0x13b3   :  { %v2026_v21 = vpop.f32.mrf.mxu1 }
0x13b5   :  { %v3211_v60 = vpop.f32.mrf.mxu1 }
0x13b7   :  { %v2135_v61 = vpop.f32.mrf.mxu1 }
0x13b9   :  { %v3226_v36 = vpop.f32.mrf.mxu1 }
0x13bb   :  { %v2138_v7 = vpop.f32.mrf.mxu1 }
0x13bd   :  { %v3227_v62 = vpop.f32.mrf.mxu1 }
0x13bf   :  { %v3468_v30 = vpop.eup %3467 }
0x13c0   :  { %2039 = vrot.lane.b32.xlu0 %v3468_v30, %s3533_s24 }
0x13c3   :  { %v2095_v5 = vpop.f32.mrf.mxu0  ;;  %v2247_v35 = vpop.f32.mrf.mxu1 }
0x13c4   :  { %v2136_v1 = vadd.f32 %v2135_v61, %v2095_v5 }
0x13c5   :  { %v3218_v8 = vpop.f32.mrf.mxu0  ;;  %v3242_v34 = vpop.f32.mrf.mxu1 }
0x13c6   :  { %v2141_v41 = vadd.f32 %v4106_v39, %v2136_v1 }
0x13c7   :  { %v2098_v9 = vpop.f32.mrf.mxu0  ;;  %v2250_v40 = vpop.f32.mrf.mxu1 }
0x13c8   :  { %3469 = vtanh.f32 %v2141_v41  ;;  %v2815_v2 = vmul.f32 -1.442695, %v2141_v41 }
0x13c9   :  { %v3219_v11 = vpop.f32.mrf.mxu0  ;;  %v3243_v12 = vpop.f32.mrf.mxu1 }
0x13cb   :  { %v2207_v13 = vpop.f32.mrf.mxu0 }
0x13cc   :  { %v2248_v63 = vadd.f32 %v2247_v35, %v2207_v13 }
0x13cd   :  { %v3234_v15 = vpop.f32.mrf.mxu0 }
0x13ce   :  { %v2253_v28 = vadd.f32 %v4190_v16, %v2248_v63 }
0x13cf   :  { %v2210_v19 = vpop.f32.mrf.mxu0 }
0x13d0   :  { %3471 = vtanh.f32 %v2253_v28  ;;  %v2818_v50 = vmul.f32 -1.442695, %v2253_v28 }
0x13d1   :  { %v3235_v22 = vpop.f32.mrf.mxu0  ;;  %3473 = vpow2.f32 %v2812_v26 }
0x13d5   :  { %v3470_v56 = vpop.eup %3469 }
0x13d6   :  { %2151 = vrot.lane.b32.xlu1 %v3470_v56, %s3533_s24 }
0x13dd   :  { %v3472_v23 = vpop.eup %3471 }
0x13de   :  { %2263 = vrot.lane.b32.xlu0 %v3472_v23, %s3533_s24  ;;  %v3474_v25 = vpop.eup %3473 }
0x13df   :  { %v2033_v27 = vadd.f32 1.0, %v3474_v25 }
0x13e1   :  { %3475 = vrcp.f32 %v2033_v27 }
0x13e2   :  { %3477 = vpow2.f32 %v2815_v2 }
0x13e3   :  { %3479 = vpow2.f32 %v2818_v50 }
0x13ee   :  { %v3476_v31 = vpop.eup %3475 }
0x13ef   :  { %v3478_v43 = vpop.eup %3477  ;;  %v2037_v51 = vmul.f32 %v3476_v31, %v4116_v42 }
0x13f0   :  { %v2145_v6 = vadd.f32 1.0, %v3478_v43  ;;  %v3480_v45 = vpop.eup %3479 }
0x13f1   :  { %v2257_v10 = vadd.f32 1.0, %v3480_v45 }
0x13f2   :  { %3481 = vrcp.f32 %v2145_v6 }
0x13f3   :  { %3483 = vrcp.f32 %v2257_v10 }
0x13ff   :  { %v3482_v46 = vpop.eup %3481 }
0x1400   :  { %v3484_v3 = vpop.eup %3483  ;;  %v2149_v52 = vmul.f32 %v3482_v46, %v4121_v44 }
0x1401   :  { %v2261_v53 = vmul.f32 %v3484_v3, %v4125_v58 }
0x1432   :  { %v2040_v38 = vpop.permute.xlu0 %2039 }
0x1433   :  { %v2042_v33 = vmul.f32 %v3476_v31, %v2040_v38 }
0x1435   :  { %2044 = vrot.lane.b32.xlu1 %v2042_v33, %s3534_s25 }
0x1448   :  { %v2152_v47 = vpop.permute.xlu1 %2151 }
0x1449   :  { %v2154_v14 = vmul.f32 %v3482_v46, %v2152_v47 }
0x144b   :  { %2156 = vrot.lane.b32.xlu0 %v2154_v14, %s3534_s25 }
0x1450   :  { %v2264_v48 = vpop.permute.xlu0 %2263 }
0x1451   :  { %v2266_v49 = vmul.f32 %v3484_v3, %v2264_v48 }
0x1453   :  { %2268 = vrot.lane.b32.xlu1 %v2266_v49, %s3534_s25 }
0x14a7   :  { %v2045_v17 = vpop.permute.xlu1 %2044 }
0x14a8   :  { %v2047_v54 = vadd.f32 %v2045_v17, %v2037_v51 }
0x14aa   :  { %3485 = vtanh.f32 %v2047_v54 }
0x14b7   :  { %v3486_v4 = vpop.eup %3485 }
0x14b8   :  { %2050 = vrot.lane.b32.xlu0 %v3486_v4, %s3533_s24 }
0x14bd   :  { %v2157_v57 = vpop.permute.xlu0 %2156 }
0x14be   :  { %v4201_v20 = vadd.f32 %v2157_v57, %v2149_v52 }
0x14c0   :  { %3487 = vtanh.f32 %v4201_v20 }
0x14c5   :  { %v2269_v32 = vpop.permute.xlu1 %2268 }
0x14c6   :  { %v4205_v59 = vadd.f32 %v2269_v32, %v2261_v53 }
0x14c8   :  { %3489 = vtanh.f32 %v4205_v59 }
0x14cd   :  { %v3488_v42 = vpop.eup %3487 }
0x14ce   :  { %2162 = vrot.lane.b32.xlu1 %v3488_v42, %s3533_s24 }
0x14d5   :  { %v3490_v24 = vpop.eup %3489 }
0x14d6   :  { %2274 = vrot.lane.b32.xlu0 %v3490_v24, %s3533_s24 }
0x152a   :  { %v2051_v21 = vpop.permute.xlu0 %2050 }
0x152b   :  { %v2053_v44 = vmul.f32 %v3476_v31, %v2051_v21 }
0x152d   :  { %v2325_v60 = vpack.c.bf16 %v2053_v44, %v2053_v44 }
0x152f   :  { %2327 = vrot.lane.b32.xlu0 %v2325_v60, %s3534_s25 }
0x1540   :  { %v2163_v61 = vpop.permute.xlu1 %2162 }
0x1541   :  { %v2165_v36 = vmul.f32 %v3482_v46, %v2163_v61 }
0x1543   :  { %v2278_v7 = vpack.c.bf16 %v2165_v36, %v2165_v36 }
0x1545   :  { %2280 = vrot.lane.b32.xlu1 %v2278_v7, %s3534_s25 }
0x1548   :  { %v2275_v58 = vpop.permute.xlu0 %2274 }
0x1549   :  { %v2277_v62 = vmul.f32 %v3484_v3, %v2275_v58 }
0x154b   :  { %v2397_v30 = vpack.c.bf16 %v2277_v62, %v2277_v62 }
0x154d   :  { %2399 = vrot.lane.b32.xlu1 %v2397_v30, %s3534_s25 }
0x15a1   :  { %v2328_v5 = vpop.permute.xlu0 %2327 }
0x15a2   :  { %3257 = vmatmul.mubr.msk.bf16.vlgmr.msra.gmra.mxu1 %vm185_vm2, %v2328_v5 }
0x15a3   :  { %3269 = vmatpush3.bf16.msra.mxu1 %v4144_v29  ;;  %3272 = vmatprep.mubr.msk.bf16.mxu1 %vm3531_vm0, %v3530_v0 }
0x15a4   :  { %3270 = vmatprep.subr.bf16.mxu1 %v3530_v0 }
0x15a7   :  { %3271 = vmatpush3.bf16.msra.mxu1 %v4153_v55 }
0x15a8   :  { %3284 = vmatprep.subr.bf16.mxu1 %v3530_v0 }
0x15b7   :  { %v2281_v35 = vpop.permute.xlu1 %2280 }
0x15b8   :  { %3249 = vmatmul.mubr.msk.bf16.vlgmr.msra.gmra.mxu0 %vm185_vm2, %v2281_v35  ;;  %3273 = vmatmul.mubr.msk.bf16.vlgmr.msra.gmra.mxu1 %vm185_vm2, %v2281_v35 }
0x15b9   :  { %3261 = vmatpush3.bf16.msra.mxu0 %v4079_v37  ;;  %3264 = vmatprep.mubr.msk.bf16.mxu0 %vm3531_vm0, %v3530_v0 }
0x15ba   :  { %3262 = vmatprep.subr.bf16.mxu0 %v3530_v0  ;;  %3285 = vmatpush3.bf16.msra.mxu1 %v4144_v29 }
0x15bb   :  { %3286 = vmatprep.subr.bf16.mxu1 %v3530_v0  ;;  %3288 = vmatprep.mubr.msk.bf16.mxu1 %vm3531_vm0, %v3530_v0 }
0x15bd   :  { %3263 = vmatpush3.bf16.msra.mxu0 %v4170_v18 }
0x15be   :  { %3287 = vmatpush3.bf16.msra.mxu1 %v4153_v55  ;;  %3276 = vmatprep.subr.bf16.mxu0 %v3530_v0 }
0x15bf   :  { %v2400_v1 = vpop.permute.xlu1 %2399 }
0x15c0   :  { %3265 = vmatmul.mubr.msk.bf16.vlgmr.msra.gmra.mxu0 %vm185_vm2, %v2400_v1 }
0x15c1   :  { %3277 = vmatpush3.bf16.msra.mxu0 %v4079_v37  ;;  %3280 = vmatprep.mubr.msk.bf16.mxu0 %vm3531_vm0, %v3530_v0 }
0x15c2   :  { %3278 = vmatprep.subr.bf16.mxu0 %v3530_v0 }
0x15c5   :  { %3279 = vmatpush3.bf16.msra.mxu0 %v4170_v18 }
0x15c6   :  { %3292 = vmatprep.subr.bf16.mxu0 %v3530_v0 }
0x1662   :  { %v2366_v29 = vpop.f32.mrf.mxu1 }
0x1664   :  { %v3258_v8 = vpop.f32.mrf.mxu1 }
0x1666   :  { %v2369_v34 = vpop.f32.mrf.mxu1 }
0x1668   :  { %v3259_v55 = vpop.f32.mrf.mxu1 }
0x1678   :  { %v2319_v41 = vpop.f32.mrf.mxu0  ;;  %v2478_v9 = vpop.f32.mrf.mxu1 }
0x1679   :  { %v2367_v40 = vadd.f32 %v2366_v29, %v2319_v41 }
0x167a   :  { %v3250_v11 = vpop.f32.mrf.mxu0  ;;  %v3274_v12 = vpop.f32.mrf.mxu1 }
0x167b   :  { %v2372_v37 = vadd.f32 %v4106_v39, %v2367_v40 }
0x167c   :  { %v2322_v13 = vpop.f32.mrf.mxu0  ;;  %v2481_v63 = vpop.f32.mrf.mxu1 }
0x167d   :  { %3491 = vtanh.f32 %v2372_v37  ;;  %v2821_v39 = vmul.f32 -1.442695, %v2372_v37 }
0x167e   :  { %v3251_v15 = vpop.f32.mrf.mxu0  ;;  %v3275_v28 = vpop.f32.mrf.mxu1 }
0x167f   :  { %v2828_v15 = vld [vmem:[%s4295_s10] ss:$0 sm:$0xff] }
0x1680   :  { %v2438_v19 = vpop.f32.mrf.mxu0 }
0x1681   :  { %v2479_v18 = vadd.f32 %v2478_v9, %v2438_v19 }
0x1682   :  { %v3266_v22 = vpop.f32.mrf.mxu0 }
0x1683   :  { %v2484_v56 = vadd.f32 %v4190_v16, %v2479_v18 }
0x1684   :  { %v2441_v23 = vpop.f32.mrf.mxu0 }
0x1685   :  { %3493 = vtanh.f32 %v2484_v56  ;;  %v2824_v2 = vmul.f32 -1.442695, %v2484_v56 }
0x1686   :  { %v3267_v26 = vpop.f32.mrf.mxu0  ;;  %3495 = vpow2.f32 %v2821_v39 }
0x1687   :  { %3497 = vpow2.f32 %v2824_v2  ;;  %v2829_v26 = vld [vmem:[%s4296_s11] ss:$0 sm:$0xff] }
0x168a   :  { %v3492_v25 = vpop.eup %3491 }
0x168b   :  { %2382 = vrot.lane.b32.xlu0 %v3492_v25, %s3533_s24  ;;  %v3321_v25 = vld [vmem:[%s4297_s12 + $0x8] sm:$0xff]  }
0x1692   :  { %v3494_v27 = vpop.eup %3493 }
0x1693   :  { %2494 = vrot.lane.b32.xlu1 %v3494_v27, %s3533_s24  ;;  %v3496_v50 = vpop.eup %3495  ;;  %v3322_v27 = vld [vmem:[%s4297_s12] sm:$0xff]  }
0x1694   :  { %v2376_v31 = vadd.f32 1.0, %v3496_v50  ;;  %v3498_v38 = vpop.eup %3497 }
0x1695   :  { %v2488_v33 = vadd.f32 1.0, %v3498_v38 }
0x1696   :  { %3499 = vrcp.f32 %v2376_v31 }
0x1697   :  { %3501 = vrcp.f32 %v2488_v33 }
0x16a3   :  { %v3500_v43 = vpop.eup %3499 }
0x16a4   :  { %v3502_v10 = vpop.eup %3501  ;;  %v2380_v14 = vmul.f32 %v3500_v43, %v4201_v20 }
0x16a5   :  { %v2492_v49 = vmul.f32 %v3502_v10, %v4205_v59 }
0x16fd   :  { %v2383_v6 = vpop.permute.xlu0 %2382 }
0x16fe   :  { %v2385_v45 = vmul.f32 %v3500_v43, %v2383_v6 }
0x1700   :  { %2387 = vrot.lane.b32.xlu0 %v2385_v45, %s3534_s25 }
0x1705   :  { %v2495_v46 = vpop.permute.xlu1 %2494 }
0x1706   :  { %v2497_v47 = vmul.f32 %v3502_v10, %v2495_v46 }
0x1708   :  { %2499 = vrot.lane.b32.xlu1 %v2497_v47, %s3534_s25 }
0x1772   :  { %v2388_v3 = vpop.permute.xlu0 %2387 }
0x1773   :  { %v2390_v48 = vadd.f32 %v2388_v3, %v2380_v14 }
0x1775   :  { %3503 = vtanh.f32 %v2390_v48 }
0x177a   :  { %v2500_v51 = vpop.permute.xlu1 %2499 }
0x177b   :  { %v2502_v17 = vadd.f32 %v2500_v51, %v2492_v49 }
0x177d   :  { %3505 = vtanh.f32 %v2502_v17 }
0x1782   :  { %v3504_v54 = vpop.eup %3503 }
0x1783   :  { %2393 = vrot.lane.b32.xlu0 %v3504_v54, %s3533_s24 }
0x178a   :  { %v3506_v4 = vpop.eup %3505 }
0x178b   :  { %2505 = vrot.lane.b32.xlu1 %v3506_v4, %s3533_s24 }
0x17f5   :  { %v2394_v52 = vpop.permute.xlu0 %2393 }
0x17f6   :  { %v2396_v57 = vmul.f32 %v3500_v43, %v2394_v52 }
0x17f8   :  { %v2556_v53 = vpack.c.bf16 %v2396_v57, %v2396_v57 }
0x17fa   :  { %2558 = vrot.lane.b32.xlu1 %v2556_v53, %s3534_s25 }
0x17fd   :  { %v2506_v20 = vpop.permute.xlu1 %2505 }
0x17fe   :  { %v2508_v32 = vmul.f32 %v3502_v10, %v2506_v20 }
0x1800   :  { %v2509_v42 = vpack.c.bf16 %v2508_v32, %v2508_v32 }
0x1802   :  { %2511 = vrot.lane.b32.xlu0 %v2509_v42, %s3534_s25 }
0x186c   :  { %v2559_v59 = vpop.permute.xlu1 %2558 }
0x186d   :  { %3289 = vmatmul.mubr.msk.bf16.vlgmr.msra.gmra.mxu1 %vm185_vm2, %v2559_v59 }
0x1874   :  { %v2512_v24 = vpop.permute.xlu0 %2511 }
0x1875   :  { %3281 = vmatmul.mubr.msk.bf16.vlgmr.msra.gmra.mxu0 %vm185_vm2, %v2512_v24 }
0x1876   :  { %3296 = vmatprep.mubr.msk.bf16.mxu0 %vm3531_vm0, %v3530_v0  ;;  %3293 = vmatpush3.bf16.msra.mxu0 %v3321_v25 }
0x1877   :  { %3294 = vmatprep.subr.bf16.mxu0 %v3530_v0  ;;  %v2830_v0 = vld [vmem:[%s4298_s13] ss:$0 sm:$0xff] }
0x187a   :  { %3295 = vmatpush3.bf16.msra.mxu0 %v3322_v27 }
0x192d   :  { %v2597_v21 = vpop.f32.mrf.mxu1 }
0x192f   :  { %v3290_v44 = vpop.f32.mrf.mxu1 }
0x1931   :  { %v2600_v60 = vpop.f32.mrf.mxu1 }
0x1933   :  { %v3291_v61 = vpop.f32.mrf.mxu1 }
0x1935   :  { %v2550_v36 = vpop.f32.mrf.mxu0 }
0x1936   :  { %v2598_v7 = vadd.f32 %v2597_v21, %v2550_v36 }
0x1937   :  { %v3282_v58 = vpop.f32.mrf.mxu0 }
0x1938   :  { %v2603_v62 = vadd.f32 %v4190_v16, %v2598_v7 }
0x1939   :  { %v2553_v30 = vpop.f32.mrf.mxu0 }
0x193a   :  { %3507 = vtanh.f32 %v2603_v62  ;;  %v2827_v1 = vmul.f32 -1.442695, %v2603_v62 }
0x193b   :  { %v3283_v5 = vpop.f32.mrf.mxu0 }
0x193c   :  { %3509 = vpow2.f32 %v2827_v1 }
0x1947   :  { %v3508_v35 = vpop.eup %3507 }
0x1948   :  { %2613 = vrot.lane.b32.xlu0 %v3508_v35, %s3533_s24 }
0x1949   :  { %v3510_v29 = vpop.eup %3509 }
0x194a   :  { %v2607_v8 = vadd.f32 1.0, %v3510_v29 }
0x194c   :  { %3511 = vrcp.f32 %v2607_v8 }
0x1959   :  { %v3512_v34 = vpop.eup %3511 }
0x195a   :  { %v2611_v9 = vmul.f32 %v3512_v34, %v2502_v17 }
0x19ba   :  { %v2614_v55 = vpop.permute.xlu0 %2613 }
0x19bb   :  { %v2616_v41 = vmul.f32 %v3512_v34, %v2614_v55 }
0x19bd   :  { %2618 = vrot.lane.b32.xlu1 %v2616_v41, %s3534_s25 }
0x1a2f   :  { %v2619_v40 = vpop.permute.xlu1 %2618 }
0x1a30   :  { %v2621_v11 = vadd.f32 %v2619_v40, %v2611_v9 }
0x1a32   :  { %3513 = vtanh.f32 %v2621_v11 }
0x1a3f   :  { %v3514_v16 = vpop.eup %3513 }
0x1a40   :  { %2624 = vrot.lane.b32.xlu0 %v3514_v16, %s3533_s24 }
0x1ab2   :  { %v2625_v12 = vpop.permute.xlu0 %2624 }
0x1ab3   :  { %v2627_v37 = vmul.f32 %v3512_v34, %v2625_v12 }
0x1ab5   :  { %2629 = vrot.lane.b32.xlu1 %v2627_v37, %s3534_s25 }
0x1b27   :  { %v2630_v13 = vpop.permute.xlu1 %2629 }
0x1b28   :  { %v2632_v63 = vsel %vm185_vm2, %v2630_v13, 0.0 }
0x1b29   :  { %2633 = vadd.xlane.f32.xlu0 %v2632_v63 }
0x1b3f   :  { %2656 = vrot.lane.b32.xlu0 %v2828_v15, %s3535_s20 }
0x1bb2   :  { %v2634_v28 = vpop.xlane.xlu0 %2633 }
0x1bb3   :  { %v2636_v19 = vmul.f32 0.03125, %v2634_v28 }
0x1bb5   :  { %v2637_v18 = vsub.f32 %v2627_v37, %v2636_v19 }
0x1bb6   :  { %v2657_v38 = vpop.permute.xlu0 %2656 }
0x1bb7   :  { %v2638_v22 = vmul.f32 %v2637_v18, %v2637_v18 }
0x1bb9   :  { %2640 = vrot.lane.b32.xlu1 %v2638_v22, %s3534_s25 }
0x1c2b   :  { %v2641_v56 = vpop.permute.xlu1 %2640 }
0x1c2c   :  { %v2643_v23 = vsel %vm185_vm2, %v2641_v56, 0.0 }
0x1c2d   :  { %2644 = vadd.xlane.f32.xlu1 %v2643_v23 }
0x1c3e   :  { %2666 = vrot.lane.b32.xlu1 %v2829_v26, %s3535_s20 }
0x1cb6   :  { %v2645_v39 = vpop.xlane.xlu1 %2644 }
0x1cb7   :  { %v2646_v2 = vmul.f32 0.03125, %v2645_v39 }
0x1cb9   :  { %v2647_v50 = vadd.f32 1e-05, %v2646_v2 }
0x1cba   :  { %v2667_v43 = vpop.permute.xlu1 %2666 }
0x1cbb   :  { %3515 = vrsqrt.f32 %v2647_v50 }
0x1cc8   :  { %v3516_v31 = vpop.eup %3515 }
0x1cc9   :  { %v2649_v33 = vmul.f32 %v3516_v31, %v2637_v18 }
0x1ccb   :  { %v2659_v6 = vmul.f32 %v2657_v38, %v2649_v33 }
0x1ccd   :  { %v2669_v45 = vadd.f32 %v2667_v43, %v2659_v6 }
0x1ccf   :  { %v2670_v10 = vpack.c.bf16 %v2669_v45, %v2669_v45 }
0x1cd1   :  { %2683 = vrot.lane.b32.xlu0 %v2670_v10, %s3534_s25 }
0x1d43   :  { %v2684_v46 = vpop.permute.xlu0 %2683 }
0x1d44   :  { %3297 = vmatmul.mubr.msk.bf16.vlgmr.msra.gmra.mxu0 %vm185_vm2, %v2684_v46 }
0x1e04   :  { %v2734_v47 = vpop.f32.mrf.mxu0 }
0x1e05   :  { %v2735_v14 = vadd.f32 %v2830_v0, %v2734_v47 }
0x1e06   :  { %v3298_v3 = vpop.f32.mrf.mxu0 }
0x1e07   :  { %2740 = vst [vmem:[%s4299_s14] sm:$0xff] %v2735_v14 }
0x1e08   :  { %v2737_v48 = vpop.f32.mrf.mxu0 }
0x1e0a   :  { %v3299_v49 = vpop.f32.mrf.mxu0 }

</bundles_post_ra>
